<compile_context>
chip_gen: v7x
topology: tpu7x:2x2x1
jax: 0.10.0
libtpu: 0.0.40
codegen_flags: <defaults>
</compile_context>

<pallas_src>
import math
import numpy as np
import jax
import jax.numpy as jnp
from jax.experimental import pallas as pl
from jax.experimental.pallas import tpu as pltpu

_BN_EPS = 1e-5


# --------------------------- in-kernel helpers ---------------------------

def _upsample(x3d, uh, uwt):
    """Separable align_corners=True bilinear upsample.

    x3d: (C, Hi, Wi) f32 value, uh: (Ho, Hi), uwt: (Wi, Wo). Returns (C, Ho*Wo) f32.
    """
    c, hi, wi = x3d.shape
    ho, wo = uh.shape[0], uwt.shape[1]
    uwt_b = jnp.broadcast_to(uwt[None, :, :], (c, wi, wo))
    a = jnp.einsum('chw,cwo->cho', x3d, uwt_b,
                   preferred_element_type=jnp.float32)          # (C, Hi, Wo)
    uh_b = jnp.broadcast_to(uh[None, :, :], (c, ho, hi))
    b = jnp.einsum('coh,chw->cow', uh_b, a,
                   preferred_element_type=jnp.float32)          # (C, Ho, Wo)
    return b.reshape(c, ho * wo)


def _build_patch(patch_ref, x_flat, cin, width, mask_l, mask_r):
    """Write the 3x3 (pad=1) im2col patch of x_flat into patch_ref[0:9*cin, :].

    x_flat: (cin, hw) f32 value, hw = height*width (row-major flatten).
    patch_ref: bf16 VMEM scratch with >= 9*cin rows and exactly hw columns.
    mask_l / mask_r: (1, hw) f32; zero where the left / right neighbour would
    wrap across an image row (W boundary). Row (H) boundaries are handled by the
    static slice clipping + explicit zero strips.
    """
    hw = x_flat.shape[1]
    for k in range(9):
        oy, ox = k // 3 - 1, k % 3 - 1
        d = oy * width + ox
        a, b = max(0, -d), min(hw, hw - d)
        r0, r1 = k * cin, (k + 1) * cin
        piece = x_flat[:, a + d:b + d]
        if ox == -1:
            piece = piece * mask_l[:, a:b]
        elif ox == 1:
            piece = piece * mask_r[:, a:b]
        patch_ref[r0:r1, a:b] = piece.astype(jnp.bfloat16)
        if a > 0:
            patch_ref[r0:r1, 0:a] = jnp.zeros((cin, a), jnp.bfloat16)
        if b < hw:
            patch_ref[r0:r1, b:hw] = jnp.zeros((cin, hw - b), jnp.bfloat16)


# ------------------------------ stage kernels ------------------------------

def _make_stage2_kernel(C, H, W):
    W2 = 2 * W
    hw = (2 * H) * (2 * W)

    def kernel(x1_ref, x2_ref, uh_ref, uwt_ref, mask_ref,
               w14_ref, b14_ref, wc2a_ref, wc2b_ref, bc2_ref,
               o_ref, patch_ref):
        mask_l, mask_r = mask_ref[0:1, :], mask_ref[1:2, :]

        u1 = _upsample(x1_ref[...], uh_ref[...], uwt_ref[...])            # (C, hw)

        # conv_upsample1 and conv_upsample4 share their input -> one patch,
        # one stacked (2C, 9C) matmul.
        _build_patch(patch_ref, u1, C, W2, mask_l, mask_r)
        r = jnp.dot(w14_ref[...], patch_ref[0:9 * C, :],
                    preferred_element_type=jnp.float32) + b14_ref[...]    # (2C, hw)
        x2_1 = r[0:C, :] * x2_ref[...].reshape(C, hw)   # conv_up1(up(x1)) * x2
        cu4 = r[C:2 * C, :]                             # conv_up4(up(x1))

        # conv_concat2(concat([x2_1, cu4], ch)) via split-K (concat never built).
        _build_patch(patch_ref, x2_1, C, W2, mask_l, mask_r)
        y = jnp.dot(wc2a_ref[...], patch_ref[0:9 * C, :],
                    preferred_element_type=jnp.float32)
        _build_patch(patch_ref, cu4, C, W2, mask_l, mask_r)
        y = y + jnp.dot(wc2b_ref[...], patch_ref[0:9 * C, :],
                        preferred_element_type=jnp.float32)
        o_ref[...] = y + bc2_ref[...]                                     # x2_2

    return kernel


def _make_stage3_kernel(C, H, W):
    H2, W2 = 2 * H, 2 * W
    W4 = 4 * W
    hw = (4 * H) * (4 * W)

    def kernel(x1_ref, x2_ref, x3_ref, x22_ref,
               uh4_ref, uw4t_ref, uh2_ref, uw2t_ref, mask_ref,
               wu2_ref, bu2_ref, wu3_ref, bu3_ref, wu5_ref, bu5_ref,
               wc3a_ref, wc3b_ref, bc3_ref, w4_ref, b4_ref, w5_ref, b5_ref,
               o_ref, patch_ref):
        mask_l, mask_r = mask_ref[0:1, :], mask_ref[1:2, :]

        def conv(x_flat, cin, w_ref, b_ref):
            _build_patch(patch_ref, x_flat, cin, W4, mask_l, mask_r)
            return jnp.dot(w_ref[...], patch_ref[0:9 * cin, :],
                           preferred_element_type=jnp.float32) + b_ref[...]

        u11 = _upsample(x1_ref[...], uh4_ref[...], uw4t_ref[...])  # up(up(x1))
        u2 = _upsample(x2_ref[...], uh2_ref[...], uw2t_ref[...])   # up(x2)
        t1 = conv(u11, C, wu2_ref, bu2_ref)                        # conv_upsample2
        t2 = conv(u2, C, wu3_ref, bu3_ref)                         # conv_upsample3
        x3_1 = t1 * t2 * x3_ref[...].reshape(C, hw)

        u22 = _upsample(x22_ref[...].reshape(2 * C, H2, W2),
                        uh2_ref[...], uw2t_ref[...])               # up(x2_2)
        t3 = conv(u22, 2 * C, wu5_ref, bu5_ref)                    # conv_upsample5

        # conv_concat3(concat([x3_1, t3], ch)) via split-K.
        _build_patch(patch_ref, x3_1, C, W4, mask_l, mask_r)
        y = jnp.dot(wc3a_ref[...], patch_ref[0:9 * C, :],
                    preferred_element_type=jnp.float32)
        _build_patch(patch_ref, t3, 2 * C, W4, mask_l, mask_r)
        y = y + jnp.dot(wc3b_ref[...], patch_ref[0:18 * C, :],
                        preferred_element_type=jnp.float32) + bc3_ref[...]

        x4 = conv(y, 3 * C, w4_ref, b4_ref)                        # conv4

        # conv5 (1x1, Cout=1, +bias): VPU multiply + cross-sublane reduce keeps
        # the output lane-dense and avoids a degenerate MXU matmul.
        out = jnp.sum(x4 * w5_ref[...], axis=0, keepdims=True) + b5_ref[...]
        o_ref[...] = out

    return kernel


# ------------------------- host-side preparation -------------------------

def _bilinear_matrix(n_in, n_out):
    # nn.Upsample(scale_factor=2, mode='bilinear', align_corners=True):
    # src = dst * (n_in - 1) / (n_out - 1)
    U = np.zeros((n_out, n_in), np.float32)
    for o in range(n_out):
        src = o * (n_in - 1) / (n_out - 1) if n_out > 1 else 0.0
        i0 = min(int(np.floor(src)), n_in - 1)
        i1 = min(i0 + 1, n_in - 1)
        wgt = src - i0
        U[o, i0] += 1.0 - wgt
        U[o, i1] += wgt
    return U


def _edge_masks(width, hw):
    w_idx = np.arange(hw) % width
    left = (w_idx != 0).astype(np.float32)            # valid when reading left neighbour
    right = (w_idx != width - 1).astype(np.float32)   # valid when reading right neighbour
    return np.stack([left, right], axis=0)            # (2, hw)


def _fold_conv(w, scale, bias):
    """Fold eval-mode BN scale into the conv weight.

    w: (3, 3, Cin, Cout) f32 -> ((Cout, 9*Cin) bf16, (Cout, 1) f32 bias).
    Row order of the flattened K axis is (ky*3+kx)*Cin + ci, matching _build_patch.
    """
    cin, cout = w.shape[2], w.shape[3]
    wf = w * scale.reshape(1, 1, 1, cout)
    wt = jnp.transpose(wf, (3, 0, 1, 2)).reshape(cout, 9 * cin)
    return wt.astype(jnp.bfloat16), bias.reshape(cout, 1).astype(jnp.float32)


def _rep_spec(a):
    zeros = (0,) * a.ndim
    return pl.BlockSpec(a.shape, lambda n: zeros)


def _batch_spec(a):
    zeros = (0,) * (a.ndim - 1)
    return pl.BlockSpec((None,) + a.shape[1:], lambda n: (n,) + zeros)


# --------------------------- params / forward ---------------------------

def _init_basic_conv(key, cin, cout):
    # deterministic synthetic weights; BN (eval mode) is later folded into the conv
    k_w, k_g, k_b, k_m, k_v = jax.random.split(key, 5)
    w = jax.random.normal(k_w, (3, 3, cin, cout), jnp.float32) / math.sqrt(cin * 9)
    gamma = 1.0 + 0.1 * jax.random.normal(k_g, (cout,), jnp.float32)
    beta = 0.1 * jax.random.normal(k_b, (cout,), jnp.float32)
    r_mean = 0.1 * jax.random.normal(k_m, (cout,), jnp.float32)
    r_var = 1.0 + 0.1 * jnp.abs(jax.random.normal(k_v, (cout,), jnp.float32))
    scale = gamma / jnp.sqrt(r_var + _BN_EPS)
    bias = beta - r_mean * scale
    return (w, scale, bias)


def init_aggregation_params(key, channel):
    keys = jax.random.split(key, 10)
    return {
        'cu1': _init_basic_conv(keys[0], channel, channel),
        'cu2': _init_basic_conv(keys[1], channel, channel),
        'cu3': _init_basic_conv(keys[2], channel, channel),
        'cu4': _init_basic_conv(keys[3], channel, channel),
        'cu5': _init_basic_conv(keys[4], 2 * channel, 2 * channel),
        'cc2': _init_basic_conv(keys[5], 2 * channel, 2 * channel),
        'cc3': _init_basic_conv(keys[6], 3 * channel, 3 * channel),
        'c4':  _init_basic_conv(keys[7], 3 * channel, 3 * channel),
        'c5w': jax.random.normal(keys[8], (3 * channel, 1), jnp.float32) / math.sqrt(3 * channel),
        'c5b': 0.1 * jax.random.normal(keys[9], (1,), jnp.float32),
    }


def aggregation_forward(params, x1, x2, x3):
    """x1 (N,C,H,W), x2 (N,C,2H,2W), x3 (N,C,4H,4W) NCHW -> (N, 1, 4H, 4W)."""
    # TODO(synk): BatchNorm uses eval/inference semantics (running stats folded
    # into a per-channel scale/bias); training-mode batch statistics are not
    # reproduced.
    f32 = jnp.float32
    x1, x2, x3 = x1.astype(f32), x2.astype(f32), x3.astype(f32)
    N, C, H, W = x1.shape
    hw2, hw3 = (2 * H) * (2 * W), (4 * H) * (4 * W)

    # ---- BN-folded (Cout, 9*Cin) bf16 conv weights ----
    wu1, bu1 = _fold_conv(*params['cu1'])
    wu4, bu4 = _fold_conv(*params['cu4'])
    w14 = jnp.concatenate([wu1, wu4], axis=0)                 # (2C, 9C) stacked
    b14 = jnp.concatenate([bu1, bu4], axis=0)                 # (2C, 1)
    wc2_w, wc2_s, wc2_b = params['cc2']
    wc2a, _ = _fold_conv(wc2_w[:, :, :C, :], wc2_s, wc2_b)    # split-K halves
    wc2b, bc2 = _fold_conv(wc2_w[:, :, C:, :], wc2_s, wc2_b)
    wu2, bu2 = _fold_conv(*params['cu2'])
    wu3, bu3 = _fold_conv(*params['cu3'])
    wu5, bu5 = _fold_conv(*params['cu5'])
    wc3_w, wc3_s, wc3_b = params['cc3']
    wc3a, _ = _fold_conv(wc3_w[:, :, :C, :], wc3_s, wc3_b)
    wc3b, bc3 = _fold_conv(wc3_w[:, :, C:, :], wc3_s, wc3_b)
    w4, b4 = _fold_conv(*params['c4'])
    w5 = params['c5w'].astype(f32)                            # (3C, 1)
    b5 = params['c5b'].reshape(1, 1).astype(f32)              # (1, 1)

    # ---- separable align_corners=True bilinear matrices & W-boundary masks ----
    uh12, uw12 = _bilinear_matrix(H, 2 * H), _bilinear_matrix(W, 2 * W)
    uh24, uw24 = _bilinear_matrix(2 * H, 4 * H), _bilinear_matrix(2 * W, 4 * W)
    uh2_a, uw2t_a = jnp.asarray(uh12), jnp.asarray(uw12.T)                 # H  -> 2H
    uh4, uw4t = jnp.asarray(uh24 @ uh12), jnp.asarray((uw24 @ uw12).T)     # H  -> 4H (up∘up)
    uh2_b, uw2t_b = jnp.asarray(uh24), jnp.asarray(uw24.T)                 # 2H -> 4H
    masks2 = jnp.asarray(_edge_masks(2 * W, hw2))
    masks3 = jnp.asarray(_edge_masks(4 * W, hw3))

    cparams = pltpu.CompilerParams(dimension_semantics=("parallel",),
                                   vmem_limit_bytes=48 * 1024 * 1024)

    # ---- stage 2: everything at (2H, 2W); outputs x2_2 (N, 2C, 4HW) ----
    x2_2 = pl.pallas_call(
        _make_stage2_kernel(C, H, W),
        out_shape=jax.ShapeDtypeStruct((N, 2 * C, hw2), f32),
        grid=(N,),
        in_specs=[_batch_spec(x1), _batch_spec(x2),
                  _rep_spec(uh2_a), _rep_spec(uw2t_a), _rep_spec(masks2),
                  _rep_spec(w14), _rep_spec(b14),
                  _rep_spec(wc2a), _rep_spec(wc2b), _rep_spec(bc2)],
        out_specs=pl.BlockSpec((None, 2 * C, hw2), lambda n: (n, 0, 0)),
        scratch_shapes=[pltpu.VMEM((9 * C, hw2), jnp.bfloat16)],
        compiler_params=cparams,
    )(x1, x2, uh2_a, uw2t_a, masks2, w14, b14, wc2a, wc2b, bc2)

    # ---- stage 3: everything at (4H, 4W); outputs the final (N, 1, 16HW) map ----
    out = pl.pallas_call(
        _make_stage3_kernel(C, H, W),
        out_shape=jax.ShapeDtypeStruct((N, 1, hw3), f32),
        grid=(N,),
        in_specs=[_batch_spec(x1), _batch_spec(x2), _batch_spec(x3), _batch_spec(x2_2),
                  _rep_spec(uh4), _rep_spec(uw4t), _rep_spec(uh2_b), _rep_spec(uw2t_b),
                  _rep_spec(masks3),
                  _rep_spec(wu2), _rep_spec(bu2), _rep_spec(wu3), _rep_spec(bu3),
                  _rep_spec(wu5), _rep_spec(bu5),
                  _rep_spec(wc3a), _rep_spec(wc3b), _rep_spec(bc3),
                  _rep_spec(w4), _rep_spec(b4), _rep_spec(w5), _rep_spec(b5)],
        out_specs=pl.BlockSpec((None, 1, hw3), lambda n: (n, 0, 0)),
        scratch_shapes=[pltpu.VMEM((27 * C, hw3), jnp.bfloat16)],
        compiler_params=cparams,
    )(x1, x2, x3, x2_2, uh4, uw4t, uh2_b, uw2t_b, masks3,
      wu2, bu2, wu3, bu3, wu5, bu5, wc3a, wc3b, bc3, w4, b4, w5, b5)

    return out.reshape(N, 1, 4 * H, 4 * W)


if __name__ == "__main__":
    N, channel = 2, 8
    H = W = 8                                   # x1 is the smallest feature map
    key = jax.random.PRNGKey(0)
    k1, k2, k3, kp = jax.random.split(key, 4)
    x1 = jax.random.normal(k1, (N, channel, H, W), jnp.float32)
    x2 = jax.random.normal(k2, (N, channel, 2 * H, 2 * W), jnp.float32)
    x3 = jax.random.normal(k3, (N, channel, 4 * H, 4 * W), jnp.float32)
    params = init_aggregation_params(kp, channel)

    out = aggregation_forward(params, x1, x2, x3)
    out = jax.block_until_ready(out)
    assert out.shape == (N, 1, 4 * H, 4 * W), out.shape
    assert bool(jnp.all(jnp.isfinite(out)))
    print("KERNEL_OK")
</pallas_src>

<mosaic_0001>
module attributes {stable_mosaic.version = 11 : i64} {
  func.func @kernel(%arg0: i32, %arg1: memref<1x8x8x8xf32, #tpu.memory_space<vmem>>, %arg2: memref<1x8x16x16xf32, #tpu.memory_space<vmem>>, %arg3: memref<16x8xf32, #tpu.memory_space<vmem>>, %arg4: memref<8x16xf32, #tpu.memory_space<vmem>>, %arg5: memref<2x256xf32, #tpu.memory_space<vmem>>, %arg6: memref<16x72xbf16, #tpu.memory_space<vmem>>, %arg7: memref<16x1xf32, #tpu.memory_space<vmem>>, %arg8: memref<16x72xbf16, #tpu.memory_space<vmem>>, %arg9: memref<16x72xbf16, #tpu.memory_space<vmem>>, %arg10: memref<16x1xf32, #tpu.memory_space<vmem>>, %arg11: memref<1x16x256xf32, #tpu.memory_space<vmem>>, %arg12: memref<72x256xbf16, #tpu.memory_space<vmem>>) attributes {dimension_semantics = [#tpu.dimension_semantics<parallel>], iteration_bounds = array<i64: 2>, scalar_prefetch = 0 : i64, scratch_operands = 1 : i64, tpu.core_type = #tpu.core_type<tc>, window_params = [{transform_indices = @transform_0, window_bounds = array<i64: 1, 8, 8, 8>}, {transform_indices = @transform_1, window_bounds = array<i64: 1, 8, 16, 16>}, {pipeline_mode = #tpu.pipeline_mode<synchronous>, transform_indices = @transform_2, window_bounds = array<i64: 16, 8>}, {pipeline_mode = #tpu.pipeline_mode<synchronous>, transform_indices = @transform_3, window_bounds = array<i64: 8, 16>}, {pipeline_mode = #tpu.pipeline_mode<synchronous>, transform_indices = @transform_4, window_bounds = array<i64: 2, 256>}, {pipeline_mode = #tpu.pipeline_mode<synchronous>, transform_indices = @transform_5, window_bounds = array<i64: 16, 72>}, {pipeline_mode = #tpu.pipeline_mode<synchronous>, transform_indices = @transform_6, window_bounds = array<i64: 16, 1>}, {pipeline_mode = #tpu.pipeline_mode<synchronous>, transform_indices = @transform_7, window_bounds = array<i64: 16, 72>}, {pipeline_mode = #tpu.pipeline_mode<synchronous>, transform_indices = @transform_8, window_bounds = array<i64: 16, 72>}, {pipeline_mode = #tpu.pipeline_mode<synchronous>, transform_indices = @transform_9, window_bounds = array<i64: 16, 1>}, {transform_indices = @transform_10, window_bounds = array<i64: 1, 16, 256>}]} {
    %c0 = arith.constant 0 : index
    %c0_0 = arith.constant 0 : index
    %0 = vector.load %arg5[%c0, %c0_0] : memref<2x256xf32, #tpu.memory_space<vmem>>, vector<1x256xf32>
    %c1 = arith.constant 1 : index
    %c0_1 = arith.constant 0 : index
    %1 = vector.load %arg5[%c1, %c0_1] : memref<2x256xf32, #tpu.memory_space<vmem>>, vector<1x256xf32>
    %c0_2 = arith.constant 0 : index
    %c0_3 = arith.constant 0 : index
    %c0_4 = arith.constant 0 : index
    %c0_5 = arith.constant 0 : index
    %2 = vector.load %arg1[%c0_2, %c0_3, %c0_4, %c0_5] : memref<1x8x8x8xf32, #tpu.memory_space<vmem>>, vector<1x8x8x8xf32>
    %3 = vector.shape_cast %2 : vector<1x8x8x8xf32> to vector<8x8x8xf32>
    %c0_6 = arith.constant 0 : index
    %c0_7 = arith.constant 0 : index
    %4 = vector.load %arg3[%c0_6, %c0_7] : memref<16x8xf32, #tpu.memory_space<vmem>>, vector<16x8xf32>
    %c0_8 = arith.constant 0 : index
    %c0_9 = arith.constant 0 : index
    %5 = vector.load %arg4[%c0_8, %c0_9] : memref<8x16xf32, #tpu.memory_space<vmem>>, vector<8x16xf32>
    %6 = vector.shape_cast %5 : vector<8x16xf32> to vector<1x8x16xf32>
    %7 = vector.shape_cast %6 : vector<1x8x16xf32> to vector<1x8x16xf32>
    %8 = vector.broadcast %7 : vector<1x8x16xf32> to vector<8x8x16xf32>
    "tpu.trace_start"() <{level = 10 : i32, message = "chw,cwo->cho"}> : () -> ()
    %cst = arith.constant dense<0.000000e+00> : vector<8x8x16xf32>
    %9 = tpu.matmul %3, %8, %cst {dimension_numbers = #tpu.dot_dimension_numbers<[2], [1], [1], [2], [0, 0, 0, 1, 1, 2], [0], [0]>} : vector<8x8x8xf32>, vector<8x8x16xf32>, vector<8x8x16xf32> -> vector<8x8x16xf32>
    "tpu.trace_stop"() : () -> ()
    %10 = vector.shape_cast %4 : vector<16x8xf32> to vector<1x16x8xf32>
    %11 = vector.shape_cast %10 : vector<1x16x8xf32> to vector<1x16x8xf32>
    %12 = vector.broadcast %11 : vector<1x16x8xf32> to vector<8x16x8xf32>
    "tpu.trace_start"() <{level = 10 : i32, message = "coh,chw->cow"}> : () -> ()
    %cst_10 = arith.constant dense<0.000000e+00> : vector<8x16x16xf32>
    %13 = tpu.matmul %12, %9, %cst_10 {dimension_numbers = #tpu.dot_dimension_numbers<[2], [1], [1], [2], [0, 0, 0, 1, 1, 2], [0], [0]>} : vector<8x16x8xf32>, vector<8x8x16xf32>, vector<8x16x16xf32> -> vector<8x16x16xf32>
    "tpu.trace_stop"() : () -> ()
    %14 = vector.shape_cast %13 : vector<8x16x16xf32> to vector<8x256xf32>
    %15 = vector.extract_strided_slice %14 {offsets = [0, 0], sizes = [8, 239], strides = [1, 1]} : vector<8x256xf32> to vector<8x239xf32>
    %16 = vector.extract_strided_slice %0 {offsets = [0, 17], sizes = [1, 239], strides = [1, 1]} : vector<1x256xf32> to vector<1x239xf32>
    %17 = vector.broadcast %16 : vector<1x239xf32> to vector<8x239xf32>
    %18 = arith.mulf %15, %17 : vector<8x239xf32>
    %19 = arith.truncf %18 : vector<8x239xf32> to vector<8x239xbf16>
    %c0_11 = arith.constant 0 : index
    %c17 = arith.constant 17 : index
    %20 = vector.load %arg12[%c0_11, %c17] : memref<72x256xbf16, #tpu.memory_space<vmem>>, vector<8x239xbf16>
    tpu.vector_store %arg12[%c0_11, %c17], %19 {strides = array<i32>} : memref<72x256xbf16, #tpu.memory_space<vmem>>, vector<8x239xbf16>,
    %cst_12 = arith.constant 0.000000e+00 : bf16
    %21 = vector.broadcast %cst_12 : bf16 to vector<8x17xbf16>
    %c0_13 = arith.constant 0 : index
    %c0_14 = arith.constant 0 : index
    %22 = vector.load %arg12[%c0_13, %c0_14] : memref<72x256xbf16, #tpu.memory_space<vmem>>, vector<8x17xbf16>
    tpu.vector_store %arg12[%c0_13, %c0_14], %21 {strides = array<i32>} : memref<72x256xbf16, #tpu.memory_space<vmem>>, vector<8x17xbf16>,
    %23 = vector.extract_strided_slice %14 {offsets = [0, 0], sizes = [8, 240], strides = [1, 1]} : vector<8x256xf32> to vector<8x240xf32>
    %24 = arith.truncf %23 : vector<8x240xf32> to vector<8x240xbf16>
    %c8 = arith.constant 8 : index
    %c16 = arith.constant 16 : index
    %25 = vector.load %arg12[%c8, %c16] : memref<72x256xbf16, #tpu.memory_space<vmem>>, vector<8x240xbf16>
    tpu.vector_store %arg12[%c8, %c16], %24 {strides = array<i32>} : memref<72x256xbf16, #tpu.memory_space<vmem>>, vector<8x240xbf16>,
    %cst_15 = arith.constant 0.000000e+00 : bf16
    %26 = vector.broadcast %cst_15 : bf16 to vector<8x16xbf16>
    %c8_16 = arith.constant 8 : index
    %c0_17 = arith.constant 0 : index
    %27 = vector.load %arg12[%c8_16, %c0_17] : memref<72x256xbf16, #tpu.memory_space<vmem>>, vector<8x16xbf16>
    tpu.vector_store %arg12[%c8_16, %c0_17], %26 {strides = array<i32>} : memref<72x256xbf16, #tpu.memory_space<vmem>>, vector<8x16xbf16>,
    %28 = vector.extract_strided_slice %14 {offsets = [0, 0], sizes = [8, 241], strides = [1, 1]} : vector<8x256xf32> to vector<8x241xf32>
    %29 = vector.extract_strided_slice %1 {offsets = [0, 15], sizes = [1, 241], strides = [1, 1]} : vector<1x256xf32> to vector<1x241xf32>
    %30 = vector.broadcast %29 : vector<1x241xf32> to vector<8x241xf32>
    %31 = arith.mulf %28, %30 : vector<8x241xf32>
    %32 = arith.truncf %31 : vector<8x241xf32> to vector<8x241xbf16>
    %c16_18 = arith.constant 16 : index
    %c15 = arith.constant 15 : index
    %33 = vector.load %arg12[%c16_18, %c15] : memref<72x256xbf16, #tpu.memory_space<vmem>>, vector<8x241xbf16>
    tpu.vector_store %arg12[%c16_18, %c15], %32 {strides = array<i32>} : memref<72x256xbf16, #tpu.memory_space<vmem>>, vector<8x241xbf16>,
    %cst_19 = arith.constant 0.000000e+00 : bf16
    %34 = vector.broadcast %cst_19 : bf16 to vector<8x15xbf16>
    %c16_20 = arith.constant 16 : index
    %c0_21 = arith.constant 0 : index
    %35 = vector.load %arg12[%c16_20, %c0_21] : memref<72x256xbf16, #tpu.memory_space<vmem>>, vector<8x15xbf16>
    tpu.vector_store %arg12[%c16_20, %c0_21], %34 {strides = array<i32>} : memref<72x256xbf16, #tpu.memory_space<vmem>>, vector<8x15xbf16>,
    %36 = vector.extract_strided_slice %14 {offsets = [0, 0], sizes = [8, 255], strides = [1, 1]} : vector<8x256xf32> to vector<8x255xf32>
    %37 = vector.extract_strided_slice %0 {offsets = [0, 1], sizes = [1, 255], strides = [1, 1]} : vector<1x256xf32> to vector<1x255xf32>
    %38 = vector.broadcast %37 : vector<1x255xf32> to vector<8x255xf32>
    %39 = arith.mulf %36, %38 : vector<8x255xf32>
    %40 = arith.truncf %39 : vector<8x255xf32> to vector<8x255xbf16>
    %c24 = arith.constant 24 : index
    %c1_22 = arith.constant 1 : index
    %41 = vector.load %arg12[%c24, %c1_22] : memref<72x256xbf16, #tpu.memory_space<vmem>>, vector<8x255xbf16>
    tpu.vector_store %arg12[%c24, %c1_22], %40 {strides = array<i32>} : memref<72x256xbf16, #tpu.memory_space<vmem>>, vector<8x255xbf16>,
    %cst_23 = arith.constant 0.000000e+00 : bf16
    %42 = vector.broadcast %cst_23 : bf16 to vector<8x1xbf16>
    %c24_24 = arith.constant 24 : index
    %c0_25 = arith.constant 0 : index
    %43 = vector.load %arg12[%c24_24, %c0_25] : memref<72x256xbf16, #tpu.memory_space<vmem>>, vector<8x1xbf16>
    tpu.vector_store %arg12[%c24_24, %c0_25], %42 {strides = array<i32>} : memref<72x256xbf16, #tpu.memory_space<vmem>>, vector<8x1xbf16>,
    %44 = arith.truncf %14 : vector<8x256xf32> to vector<8x256xbf16>
    %c32 = arith.constant 32 : index
    %c0_26 = arith.constant 0 : index
    %45 = vector.load %arg12[%c32, %c0_26] : memref<72x256xbf16, #tpu.memory_space<vmem>>, vector<8x256xbf16>
    tpu.vector_store %arg12[%c32, %c0_26], %44 {strides = array<i32>} : memref<72x256xbf16, #tpu.memory_space<vmem>>, vector<8x256xbf16>,
    %46 = vector.extract_strided_slice %14 {offsets = [0, 1], sizes = [8, 255], strides = [1, 1]} : vector<8x256xf32> to vector<8x255xf32>
    %47 = vector.extract_strided_slice %1 {offsets = [0, 0], sizes = [1, 255], strides = [1, 1]} : vector<1x256xf32> to vector<1x255xf32>
    %48 = vector.broadcast %47 : vector<1x255xf32> to vector<8x255xf32>
    %49 = arith.mulf %46, %48 : vector<8x255xf32>
    %50 = arith.truncf %49 : vector<8x255xf32> to vector<8x255xbf16>
    %c40 = arith.constant 40 : index
    %c0_27 = arith.constant 0 : index
    %51 = vector.load %arg12[%c40, %c0_27] : memref<72x256xbf16, #tpu.memory_space<vmem>>, vector<8x255xbf16>
    tpu.vector_store %arg12[%c40, %c0_27], %50 {strides = array<i32>} : memref<72x256xbf16, #tpu.memory_space<vmem>>, vector<8x255xbf16>,
    %cst_28 = arith.constant 0.000000e+00 : bf16
    %52 = vector.broadcast %cst_28 : bf16 to vector<8x1xbf16>
    %c40_29 = arith.constant 40 : index
    %c255 = arith.constant 255 : index
    %53 = vector.load %arg12[%c40_29, %c255] : memref<72x256xbf16, #tpu.memory_space<vmem>>, vector<8x1xbf16>
    tpu.vector_store %arg12[%c40_29, %c255], %52 {strides = array<i32>} : memref<72x256xbf16, #tpu.memory_space<vmem>>, vector<8x1xbf16>,
    %54 = vector.extract_strided_slice %14 {offsets = [0, 15], sizes = [8, 241], strides = [1, 1]} : vector<8x256xf32> to vector<8x241xf32>
    %55 = vector.extract_strided_slice %0 {offsets = [0, 0], sizes = [1, 241], strides = [1, 1]} : vector<1x256xf32> to vector<1x241xf32>
    %56 = vector.broadcast %55 : vector<1x241xf32> to vector<8x241xf32>
    %57 = arith.mulf %54, %56 : vector<8x241xf32>
    %58 = arith.truncf %57 : vector<8x241xf32> to vector<8x241xbf16>
    %c48 = arith.constant 48 : index
    %c0_30 = arith.constant 0 : index
    %59 = vector.load %arg12[%c48, %c0_30] : memref<72x256xbf16, #tpu.memory_space<vmem>>, vector<8x241xbf16>
    tpu.vector_store %arg12[%c48, %c0_30], %58 {strides = array<i32>} : memref<72x256xbf16, #tpu.memory_space<vmem>>, vector<8x241xbf16>,
    %cst_31 = arith.constant 0.000000e+00 : bf16
    %60 = vector.broadcast %cst_31 : bf16 to vector<8x15xbf16>
    %c48_32 = arith.constant 48 : index
    %c241 = arith.constant 241 : index
    %61 = vector.load %arg12[%c48_32, %c241] : memref<72x256xbf16, #tpu.memory_space<vmem>>, vector<8x15xbf16>
    tpu.vector_store %arg12[%c48_32, %c241], %60 {strides = array<i32>} : memref<72x256xbf16, #tpu.memory_space<vmem>>, vector<8x15xbf16>,
    %62 = vector.extract_strided_slice %14 {offsets = [0, 16], sizes = [8, 240], strides = [1, 1]} : vector<8x256xf32> to vector<8x240xf32>
    %63 = arith.truncf %62 : vector<8x240xf32> to vector<8x240xbf16>
    %c56 = arith.constant 56 : index
    %c0_33 = arith.constant 0 : index
    %64 = vector.load %arg12[%c56, %c0_33] : memref<72x256xbf16, #tpu.memory_space<vmem>>, vector<8x240xbf16>
    tpu.vector_store %arg12[%c56, %c0_33], %63 {strides = array<i32>} : memref<72x256xbf16, #tpu.memory_space<vmem>>, vector<8x240xbf16>,
    %cst_34 = arith.constant 0.000000e+00 : bf16
    %65 = vector.broadcast %cst_34 : bf16 to vector<8x16xbf16>
    %c56_35 = arith.constant 56 : index
    %c240 = arith.constant 240 : index
    %66 = vector.load %arg12[%c56_35, %c240] : memref<72x256xbf16, #tpu.memory_space<vmem>>, vector<8x16xbf16>
    tpu.vector_store %arg12[%c56_35, %c240], %65 {strides = array<i32>} : memref<72x256xbf16, #tpu.memory_space<vmem>>, vector<8x16xbf16>,
    %67 = vector.extract_strided_slice %14 {offsets = [0, 17], sizes = [8, 239], strides = [1, 1]} : vector<8x256xf32> to vector<8x239xf32>
    %68 = vector.extract_strided_slice %1 {offsets = [0, 0], sizes = [1, 239], strides = [1, 1]} : vector<1x256xf32> to vector<1x239xf32>
    %69 = vector.broadcast %68 : vector<1x239xf32> to vector<8x239xf32>
    %70 = arith.mulf %67, %69 : vector<8x239xf32>
    %71 = arith.truncf %70 : vector<8x239xf32> to vector<8x239xbf16>
    %c64 = arith.constant 64 : index
    %c0_36 = arith.constant 0 : index
    %72 = vector.load %arg12[%c64, %c0_36] : memref<72x256xbf16, #tpu.memory_space<vmem>>, vector<8x239xbf16>
    tpu.vector_store %arg12[%c64, %c0_36], %71 {strides = array<i32>} : memref<72x256xbf16, #tpu.memory_space<vmem>>, vector<8x239xbf16>,
    %cst_37 = arith.constant 0.000000e+00 : bf16
    %73 = vector.broadcast %cst_37 : bf16 to vector<8x17xbf16>
    %c64_38 = arith.constant 64 : index
    %c239 = arith.constant 239 : index
    %74 = vector.load %arg12[%c64_38, %c239] : memref<72x256xbf16, #tpu.memory_space<vmem>>, vector<8x17xbf16>
    tpu.vector_store %arg12[%c64_38, %c239], %73 {strides = array<i32>} : memref<72x256xbf16, #tpu.memory_space<vmem>>, vector<8x17xbf16>,
    %c0_39 = arith.constant 0 : index
    %c0_40 = arith.constant 0 : index
    %75 = vector.load %arg6[%c0_39, %c0_40] : memref<16x72xbf16, #tpu.memory_space<vmem>>, vector<16x72xbf16>
    %c0_41 = arith.constant 0 : index
    %c0_42 = arith.constant 0 : index
    %76 = vector.load %arg12[%c0_41, %c0_42] : memref<72x256xbf16, #tpu.memory_space<vmem>>, vector<72x256xbf16>
    %cst_43 = arith.constant dense<0.000000e+00> : vector<16x256xf32>
    %77 = tpu.matmul %75, %76, %cst_43 {dimension_numbers = #tpu.dot_dimension_numbers<[1], [0], [0], [1], [0, 0, 1, 1], [], []>} : vector<16x72xbf16>, vector<72x256xbf16>, vector<16x256xf32> -> vector<16x256xf32>
    %c0_44 = arith.constant 0 : index
    %c0_45 = arith.constant 0 : index
    %78 = vector.load %arg7[%c0_44, %c0_45] : memref<16x1xf32, #tpu.memory_space<vmem>>, vector<16x1xf32>
    %79 = vector.broadcast %78 : vector<16x1xf32> to vector<16x256xf32>
    %80 = arith.addf %77, %79 : vector<16x256xf32>
    %81 = vector.extract_strided_slice %80 {offsets = [0, 0], sizes = [8, 256], strides = [1, 1]} : vector<16x256xf32> to vector<8x256xf32>
    %c0_46 = arith.constant 0 : index
    %c0_47 = arith.constant 0 : index
    %c0_48 = arith.constant 0 : index
    %c0_49 = arith.constant 0 : index
    %82 = vector.load %arg2[%c0_46, %c0_47, %c0_48, %c0_49] : memref<1x8x16x16xf32, #tpu.memory_space<vmem>>, vector<1x8x16x16xf32>
    %83 = vector.shape_cast %82 : vector<1x8x16x16xf32> to vector<8x16x16xf32>
    %84 = vector.shape_cast %83 : vector<8x16x16xf32> to vector<8x256xf32>
    %85 = arith.mulf %81, %84 : vector<8x256xf32>
    %86 = vector.extract_strided_slice %80 {offsets = [8, 0], sizes = [8, 256], strides = [1, 1]} : vector<16x256xf32> to vector<8x256xf32>
    %87 = vector.extract_strided_slice %85 {offsets = [0, 0], sizes = [8, 239], strides = [1, 1]} : vector<8x256xf32> to vector<8x239xf32>
    %88 = vector.extract_strided_slice %0 {offsets = [0, 17], sizes = [1, 239], strides = [1, 1]} : vector<1x256xf32> to vector<1x239xf32>
    %89 = vector.broadcast %88 : vector<1x239xf32> to vector<8x239xf32>
    %90 = arith.mulf %87, %89 : vector<8x239xf32>
    %91 = arith.truncf %90 : vector<8x239xf32> to vector<8x239xbf16>
    %c0_50 = arith.constant 0 : index
    %c17_51 = arith.constant 17 : index
    %92 = vector.load %arg12[%c0_50, %c17_51] : memref<72x256xbf16, #tpu.memory_space<vmem>>, vector<8x239xbf16>
    tpu.vector_store %arg12[%c0_50, %c17_51], %91 {strides = array<i32>} : memref<72x256xbf16, #tpu.memory_space<vmem>>, vector<8x239xbf16>,
    %cst_52 = arith.constant 0.000000e+00 : bf16
    %93 = vector.broadcast %cst_52 : bf16 to vector<8x17xbf16>
    %c0_53 = arith.constant 0 : index
    %c0_54 = arith.constant 0 : index
    %94 = vector.load %arg12[%c0_53, %c0_54] : memref<72x256xbf16, #tpu.memory_space<vmem>>, vector<8x17xbf16>
    tpu.vector_store %arg12[%c0_53, %c0_54], %93 {strides = array<i32>} : memref<72x256xbf16, #tpu.memory_space<vmem>>, vector<8x17xbf16>,
    %95 = vector.extract_strided_slice %85 {offsets = [0, 0], sizes = [8, 240], strides = [1, 1]} : vector<8x256xf32> to vector<8x240xf32>
    %96 = arith.truncf %95 : vector<8x240xf32> to vector<8x240xbf16>
    %c8_55 = arith.constant 8 : index
    %c16_56 = arith.constant 16 : index
    %97 = vector.load %arg12[%c8_55, %c16_56] : memref<72x256xbf16, #tpu.memory_space<vmem>>, vector<8x240xbf16>
    tpu.vector_store %arg12[%c8_55, %c16_56], %96 {strides = array<i32>} : memref<72x256xbf16, #tpu.memory_space<vmem>>, vector<8x240xbf16>,
    %cst_57 = arith.constant 0.000000e+00 : bf16
    %98 = vector.broadcast %cst_57 : bf16 to vector<8x16xbf16>
    %c8_58 = arith.constant 8 : index
    %c0_59 = arith.constant 0 : index
    %99 = vector.load %arg12[%c8_58, %c0_59] : memref<72x256xbf16, #tpu.memory_space<vmem>>, vector<8x16xbf16>
    tpu.vector_store %arg12[%c8_58, %c0_59], %98 {strides = array<i32>} : memref<72x256xbf16, #tpu.memory_space<vmem>>, vector<8x16xbf16>,
    %100 = vector.extract_strided_slice %85 {offsets = [0, 0], sizes = [8, 241], strides = [1, 1]} : vector<8x256xf32> to vector<8x241xf32>
    %101 = vector.extract_strided_slice %1 {offsets = [0, 15], sizes = [1, 241], strides = [1, 1]} : vector<1x256xf32> to vector<1x241xf32>
    %102 = vector.broadcast %101 : vector<1x241xf32> to vector<8x241xf32>
    %103 = arith.mulf %100, %102 : vector<8x241xf32>
    %104 = arith.truncf %103 : vector<8x241xf32> to vector<8x241xbf16>
    %c16_60 = arith.constant 16 : index
    %c15_61 = arith.constant 15 : index
    %105 = vector.load %arg12[%c16_60, %c15_61] : memref<72x256xbf16, #tpu.memory_space<vmem>>, vector<8x241xbf16>
    tpu.vector_store %arg12[%c16_60, %c15_61], %104 {strides = array<i32>} : memref<72x256xbf16, #tpu.memory_space<vmem>>, vector<8x241xbf16>,
    %cst_62 = arith.constant 0.000000e+00 : bf16
    %106 = vector.broadcast %cst_62 : bf16 to vector<8x15xbf16>
    %c16_63 = arith.constant 16 : index
    %c0_64 = arith.constant 0 : index
    %107 = vector.load %arg12[%c16_63, %c0_64] : memref<72x256xbf16, #tpu.memory_space<vmem>>, vector<8x15xbf16>
    tpu.vector_store %arg12[%c16_63, %c0_64], %106 {strides = array<i32>} : memref<72x256xbf16, #tpu.memory_space<vmem>>, vector<8x15xbf16>,
    %108 = vector.extract_strided_slice %85 {offsets = [0, 0], sizes = [8, 255], strides = [1, 1]} : vector<8x256xf32> to vector<8x255xf32>
    %109 = vector.extract_strided_slice %0 {offsets = [0, 1], sizes = [1, 255], strides = [1, 1]} : vector<1x256xf32> to vector<1x255xf32>
    %110 = vector.broadcast %109 : vector<1x255xf32> to vector<8x255xf32>
    %111 = arith.mulf %108, %110 : vector<8x255xf32>
    %112 = arith.truncf %111 : vector<8x255xf32> to vector<8x255xbf16>
    %c24_65 = arith.constant 24 : index
    %c1_66 = arith.constant 1 : index
    %113 = vector.load %arg12[%c24_65, %c1_66] : memref<72x256xbf16, #tpu.memory_space<vmem>>, vector<8x255xbf16>
    tpu.vector_store %arg12[%c24_65, %c1_66], %112 {strides = array<i32>} : memref<72x256xbf16, #tpu.memory_space<vmem>>, vector<8x255xbf16>,
    %cst_67 = arith.constant 0.000000e+00 : bf16
    %114 = vector.broadcast %cst_67 : bf16 to vector<8x1xbf16>
    %c24_68 = arith.constant 24 : index
    %c0_69 = arith.constant 0 : index
    %115 = vector.load %arg12[%c24_68, %c0_69] : memref<72x256xbf16, #tpu.memory_space<vmem>>, vector<8x1xbf16>
    tpu.vector_store %arg12[%c24_68, %c0_69], %114 {strides = array<i32>} : memref<72x256xbf16, #tpu.memory_space<vmem>>, vector<8x1xbf16>,
    %116 = arith.truncf %85 : vector<8x256xf32> to vector<8x256xbf16>
    %c32_70 = arith.constant 32 : index
    %c0_71 = arith.constant 0 : index
    %117 = vector.load %arg12[%c32_70, %c0_71] : memref<72x256xbf16, #tpu.memory_space<vmem>>, vector<8x256xbf16>
    tpu.vector_store %arg12[%c32_70, %c0_71], %116 {strides = array<i32>} : memref<72x256xbf16, #tpu.memory_space<vmem>>, vector<8x256xbf16>,
    %118 = vector.extract_strided_slice %85 {offsets = [0, 1], sizes = [8, 255], strides = [1, 1]} : vector<8x256xf32> to vector<8x255xf32>
    %119 = vector.extract_strided_slice %1 {offsets = [0, 0], sizes = [1, 255], strides = [1, 1]} : vector<1x256xf32> to vector<1x255xf32>
    %120 = vector.broadcast %119 : vector<1x255xf32> to vector<8x255xf32>
    %121 = arith.mulf %118, %120 : vector<8x255xf32>
    %122 = arith.truncf %121 : vector<8x255xf32> to vector<8x255xbf16>
    %c40_72 = arith.constant 40 : index
    %c0_73 = arith.constant 0 : index
    %123 = vector.load %arg12[%c40_72, %c0_73] : memref<72x256xbf16, #tpu.memory_space<vmem>>, vector<8x255xbf16>
    tpu.vector_store %arg12[%c40_72, %c0_73], %122 {strides = array<i32>} : memref<72x256xbf16, #tpu.memory_space<vmem>>, vector<8x255xbf16>,
    %cst_74 = arith.constant 0.000000e+00 : bf16
    %124 = vector.broadcast %cst_74 : bf16 to vector<8x1xbf16>
    %c40_75 = arith.constant 40 : index
    %c255_76 = arith.constant 255 : index
    %125 = vector.load %arg12[%c40_75, %c255_76] : memref<72x256xbf16, #tpu.memory_space<vmem>>, vector<8x1xbf16>
    tpu.vector_store %arg12[%c40_75, %c255_76], %124 {strides = array<i32>} : memref<72x256xbf16, #tpu.memory_space<vmem>>, vector<8x1xbf16>,
    %126 = vector.extract_strided_slice %85 {offsets = [0, 15], sizes = [8, 241], strides = [1, 1]} : vector<8x256xf32> to vector<8x241xf32>
    %127 = vector.extract_strided_slice %0 {offsets = [0, 0], sizes = [1, 241], strides = [1, 1]} : vector<1x256xf32> to vector<1x241xf32>
    %128 = vector.broadcast %127 : vector<1x241xf32> to vector<8x241xf32>
    %129 = arith.mulf %126, %128 : vector<8x241xf32>
    %130 = arith.truncf %129 : vector<8x241xf32> to vector<8x241xbf16>
    %c48_77 = arith.constant 48 : index
    %c0_78 = arith.constant 0 : index
    %131 = vector.load %arg12[%c48_77, %c0_78] : memref<72x256xbf16, #tpu.memory_space<vmem>>, vector<8x241xbf16>
    tpu.vector_store %arg12[%c48_77, %c0_78], %130 {strides = array<i32>} : memref<72x256xbf16, #tpu.memory_space<vmem>>, vector<8x241xbf16>,
    %cst_79 = arith.constant 0.000000e+00 : bf16
    %132 = vector.broadcast %cst_79 : bf16 to vector<8x15xbf16>
    %c48_80 = arith.constant 48 : index
    %c241_81 = arith.constant 241 : index
    %133 = vector.load %arg12[%c48_80, %c241_81] : memref<72x256xbf16, #tpu.memory_space<vmem>>, vector<8x15xbf16>
    tpu.vector_store %arg12[%c48_80, %c241_81], %132 {strides = array<i32>} : memref<72x256xbf16, #tpu.memory_space<vmem>>, vector<8x15xbf16>,
    %134 = vector.extract_strided_slice %85 {offsets = [0, 16], sizes = [8, 240], strides = [1, 1]} : vector<8x256xf32> to vector<8x240xf32>
    %135 = arith.truncf %134 : vector<8x240xf32> to vector<8x240xbf16>
    %c56_82 = arith.constant 56 : index
    %c0_83 = arith.constant 0 : index
    %136 = vector.load %arg12[%c56_82, %c0_83] : memref<72x256xbf16, #tpu.memory_space<vmem>>, vector<8x240xbf16>
    tpu.vector_store %arg12[%c56_82, %c0_83], %135 {strides = array<i32>} : memref<72x256xbf16, #tpu.memory_space<vmem>>, vector<8x240xbf16>,
    %cst_84 = arith.constant 0.000000e+00 : bf16
    %137 = vector.broadcast %cst_84 : bf16 to vector<8x16xbf16>
    %c56_85 = arith.constant 56 : index
    %c240_86 = arith.constant 240 : index
    %138 = vector.load %arg12[%c56_85, %c240_86] : memref<72x256xbf16, #tpu.memory_space<vmem>>, vector<8x16xbf16>
    tpu.vector_store %arg12[%c56_85, %c240_86], %137 {strides = array<i32>} : memref<72x256xbf16, #tpu.memory_space<vmem>>, vector<8x16xbf16>,
    %139 = vector.extract_strided_slice %85 {offsets = [0, 17], sizes = [8, 239], strides = [1, 1]} : vector<8x256xf32> to vector<8x239xf32>
    %140 = vector.extract_strided_slice %1 {offsets = [0, 0], sizes = [1, 239], strides = [1, 1]} : vector<1x256xf32> to vector<1x239xf32>
    %141 = vector.broadcast %140 : vector<1x239xf32> to vector<8x239xf32>
    %142 = arith.mulf %139, %141 : vector<8x239xf32>
    %143 = arith.truncf %142 : vector<8x239xf32> to vector<8x239xbf16>
    %c64_87 = arith.constant 64 : index
    %c0_88 = arith.constant 0 : index
    %144 = vector.load %arg12[%c64_87, %c0_88] : memref<72x256xbf16, #tpu.memory_space<vmem>>, vector<8x239xbf16>
    tpu.vector_store %arg12[%c64_87, %c0_88], %143 {strides = array<i32>} : memref<72x256xbf16, #tpu.memory_space<vmem>>, vector<8x239xbf16>,
    %cst_89 = arith.constant 0.000000e+00 : bf16
    %145 = vector.broadcast %cst_89 : bf16 to vector<8x17xbf16>
    %c64_90 = arith.constant 64 : index
    %c239_91 = arith.constant 239 : index
    %146 = vector.load %arg12[%c64_90, %c239_91] : memref<72x256xbf16, #tpu.memory_space<vmem>>, vector<8x17xbf16>
    tpu.vector_store %arg12[%c64_90, %c239_91], %145 {strides = array<i32>} : memref<72x256xbf16, #tpu.memory_space<vmem>>, vector<8x17xbf16>,
    %c0_92 = arith.constant 0 : index
    %c0_93 = arith.constant 0 : index
    %147 = vector.load %arg8[%c0_92, %c0_93] : memref<16x72xbf16, #tpu.memory_space<vmem>>, vector<16x72xbf16>
    %c0_94 = arith.constant 0 : index
    %c0_95 = arith.constant 0 : index
    %148 = vector.load %arg12[%c0_94, %c0_95] : memref<72x256xbf16, #tpu.memory_space<vmem>>, vector<72x256xbf16>
    %cst_96 = arith.constant dense<0.000000e+00> : vector<16x256xf32>
    %149 = tpu.matmul %147, %148, %cst_96 {dimension_numbers = #tpu.dot_dimension_numbers<[1], [0], [0], [1], [0, 0, 1, 1], [], []>} : vector<16x72xbf16>, vector<72x256xbf16>, vector<16x256xf32> -> vector<16x256xf32>
    %150 = vector.extract_strided_slice %86 {offsets = [0, 0], sizes = [8, 239], strides = [1, 1]} : vector<8x256xf32> to vector<8x239xf32>
    %151 = vector.extract_strided_slice %0 {offsets = [0, 17], sizes = [1, 239], strides = [1, 1]} : vector<1x256xf32> to vector<1x239xf32>
    %152 = vector.broadcast %151 : vector<1x239xf32> to vector<8x239xf32>
    %153 = arith.mulf %150, %152 : vector<8x239xf32>
    %154 = arith.truncf %153 : vector<8x239xf32> to vector<8x239xbf16>
    %c0_97 = arith.constant 0 : index
    %c17_98 = arith.constant 17 : index
    %155 = vector.load %arg12[%c0_97, %c17_98] : memref<72x256xbf16, #tpu.memory_space<vmem>>, vector<8x239xbf16>
    tpu.vector_store %arg12[%c0_97, %c17_98], %154 {strides = array<i32>} : memref<72x256xbf16, #tpu.memory_space<vmem>>, vector<8x239xbf16>,
    %cst_99 = arith.constant 0.000000e+00 : bf16
    %156 = vector.broadcast %cst_99 : bf16 to vector<8x17xbf16>
    %c0_100 = arith.constant 0 : index
    %c0_101 = arith.constant 0 : index
    %157 = vector.load %arg12[%c0_100, %c0_101] : memref<72x256xbf16, #tpu.memory_space<vmem>>, vector<8x17xbf16>
    tpu.vector_store %arg12[%c0_100, %c0_101], %156 {strides = array<i32>} : memref<72x256xbf16, #tpu.memory_space<vmem>>, vector<8x17xbf16>,
    %158 = vector.extract_strided_slice %86 {offsets = [0, 0], sizes = [8, 240], strides = [1, 1]} : vector<8x256xf32> to vector<8x240xf32>
    %159 = arith.truncf %158 : vector<8x240xf32> to vector<8x240xbf16>
    %c8_102 = arith.constant 8 : index
    %c16_103 = arith.constant 16 : index
    %160 = vector.load %arg12[%c8_102, %c16_103] : memref<72x256xbf16, #tpu.memory_space<vmem>>, vector<8x240xbf16>
    tpu.vector_store %arg12[%c8_102, %c16_103], %159 {strides = array<i32>} : memref<72x256xbf16, #tpu.memory_space<vmem>>, vector<8x240xbf16>,
    %cst_104 = arith.constant 0.000000e+00 : bf16
    %161 = vector.broadcast %cst_104 : bf16 to vector<8x16xbf16>
    %c8_105 = arith.constant 8 : index
    %c0_106 = arith.constant 0 : index
    %162 = vector.load %arg12[%c8_105, %c0_106] : memref<72x256xbf16, #tpu.memory_space<vmem>>, vector<8x16xbf16>
    tpu.vector_store %arg12[%c8_105, %c0_106], %161 {strides = array<i32>} : memref<72x256xbf16, #tpu.memory_space<vmem>>, vector<8x16xbf16>,
    %163 = vector.extract_strided_slice %86 {offsets = [0, 0], sizes = [8, 241], strides = [1, 1]} : vector<8x256xf32> to vector<8x241xf32>
    %164 = vector.extract_strided_slice %1 {offsets = [0, 15], sizes = [1, 241], strides = [1, 1]} : vector<1x256xf32> to vector<1x241xf32>
    %165 = vector.broadcast %164 : vector<1x241xf32> to vector<8x241xf32>
    %166 = arith.mulf %163, %165 : vector<8x241xf32>
    %167 = arith.truncf %166 : vector<8x241xf32> to vector<8x241xbf16>
    %c16_107 = arith.constant 16 : index
    %c15_108 = arith.constant 15 : index
    %168 = vector.load %arg12[%c16_107, %c15_108] : memref<72x256xbf16, #tpu.memory_space<vmem>>, vector<8x241xbf16>
    tpu.vector_store %arg12[%c16_107, %c15_108], %167 {strides = array<i32>} : memref<72x256xbf16, #tpu.memory_space<vmem>>, vector<8x241xbf16>,
    %cst_109 = arith.constant 0.000000e+00 : bf16
    %169 = vector.broadcast %cst_109 : bf16 to vector<8x15xbf16>
    %c16_110 = arith.constant 16 : index
    %c0_111 = arith.constant 0 : index
    %170 = vector.load %arg12[%c16_110, %c0_111] : memref<72x256xbf16, #tpu.memory_space<vmem>>, vector<8x15xbf16>
    tpu.vector_store %arg12[%c16_110, %c0_111], %169 {strides = array<i32>} : memref<72x256xbf16, #tpu.memory_space<vmem>>, vector<8x15xbf16>,
    %171 = vector.extract_strided_slice %86 {offsets = [0, 0], sizes = [8, 255], strides = [1, 1]} : vector<8x256xf32> to vector<8x255xf32>
    %172 = vector.extract_strided_slice %0 {offsets = [0, 1], sizes = [1, 255], strides = [1, 1]} : vector<1x256xf32> to vector<1x255xf32>
    %173 = vector.broadcast %172 : vector<1x255xf32> to vector<8x255xf32>
    %174 = arith.mulf %171, %173 : vector<8x255xf32>
    %175 = arith.truncf %174 : vector<8x255xf32> to vector<8x255xbf16>
    %c24_112 = arith.constant 24 : index
    %c1_113 = arith.constant 1 : index
    %176 = vector.load %arg12[%c24_112, %c1_113] : memref<72x256xbf16, #tpu.memory_space<vmem>>, vector<8x255xbf16>
    tpu.vector_store %arg12[%c24_112, %c1_113], %175 {strides = array<i32>} : memref<72x256xbf16, #tpu.memory_space<vmem>>, vector<8x255xbf16>,
    %cst_114 = arith.constant 0.000000e+00 : bf16
    %177 = vector.broadcast %cst_114 : bf16 to vector<8x1xbf16>
    %c24_115 = arith.constant 24 : index
    %c0_116 = arith.constant 0 : index
    %178 = vector.load %arg12[%c24_115, %c0_116] : memref<72x256xbf16, #tpu.memory_space<vmem>>, vector<8x1xbf16>
    tpu.vector_store %arg12[%c24_115, %c0_116], %177 {strides = array<i32>} : memref<72x256xbf16, #tpu.memory_space<vmem>>, vector<8x1xbf16>,
    %179 = arith.truncf %86 : vector<8x256xf32> to vector<8x256xbf16>
    %c32_117 = arith.constant 32 : index
    %c0_118 = arith.constant 0 : index
    %180 = vector.load %arg12[%c32_117, %c0_118] : memref<72x256xbf16, #tpu.memory_space<vmem>>, vector<8x256xbf16>
    tpu.vector_store %arg12[%c32_117, %c0_118], %179 {strides = array<i32>} : memref<72x256xbf16, #tpu.memory_space<vmem>>, vector<8x256xbf16>,
    %181 = vector.extract_strided_slice %86 {offsets = [0, 1], sizes = [8, 255], strides = [1, 1]} : vector<8x256xf32> to vector<8x255xf32>
    %182 = vector.extract_strided_slice %1 {offsets = [0, 0], sizes = [1, 255], strides = [1, 1]} : vector<1x256xf32> to vector<1x255xf32>
    %183 = vector.broadcast %182 : vector<1x255xf32> to vector<8x255xf32>
    %184 = arith.mulf %181, %183 : vector<8x255xf32>
    %185 = arith.truncf %184 : vector<8x255xf32> to vector<8x255xbf16>
    %c40_119 = arith.constant 40 : index
    %c0_120 = arith.constant 0 : index
    %186 = vector.load %arg12[%c40_119, %c0_120] : memref<72x256xbf16, #tpu.memory_space<vmem>>, vector<8x255xbf16>
    tpu.vector_store %arg12[%c40_119, %c0_120], %185 {strides = array<i32>} : memref<72x256xbf16, #tpu.memory_space<vmem>>, vector<8x255xbf16>,
    %cst_121 = arith.constant 0.000000e+00 : bf16
    %187 = vector.broadcast %cst_121 : bf16 to vector<8x1xbf16>
    %c40_122 = arith.constant 40 : index
    %c255_123 = arith.constant 255 : index
    %188 = vector.load %arg12[%c40_122, %c255_123] : memref<72x256xbf16, #tpu.memory_space<vmem>>, vector<8x1xbf16>
    tpu.vector_store %arg12[%c40_122, %c255_123], %187 {strides = array<i32>} : memref<72x256xbf16, #tpu.memory_space<vmem>>, vector<8x1xbf16>,
    %189 = vector.extract_strided_slice %86 {offsets = [0, 15], sizes = [8, 241], strides = [1, 1]} : vector<8x256xf32> to vector<8x241xf32>
    %190 = vector.extract_strided_slice %0 {offsets = [0, 0], sizes = [1, 241], strides = [1, 1]} : vector<1x256xf32> to vector<1x241xf32>
    %191 = vector.broadcast %190 : vector<1x241xf32> to vector<8x241xf32>
    %192 = arith.mulf %189, %191 : vector<8x241xf32>
    %193 = arith.truncf %192 : vector<8x241xf32> to vector<8x241xbf16>
    %c48_124 = arith.constant 48 : index
    %c0_125 = arith.constant 0 : index
    %194 = vector.load %arg12[%c48_124, %c0_125] : memref<72x256xbf16, #tpu.memory_space<vmem>>, vector<8x241xbf16>
    tpu.vector_store %arg12[%c48_124, %c0_125], %193 {strides = array<i32>} : memref<72x256xbf16, #tpu.memory_space<vmem>>, vector<8x241xbf16>,
    %cst_126 = arith.constant 0.000000e+00 : bf16
    %195 = vector.broadcast %cst_126 : bf16 to vector<8x15xbf16>
    %c48_127 = arith.constant 48 : index
    %c241_128 = arith.constant 241 : index
    %196 = vector.load %arg12[%c48_127, %c241_128] : memref<72x256xbf16, #tpu.memory_space<vmem>>, vector<8x15xbf16>
    tpu.vector_store %arg12[%c48_127, %c241_128], %195 {strides = array<i32>} : memref<72x256xbf16, #tpu.memory_space<vmem>>, vector<8x15xbf16>,
    %197 = vector.extract_strided_slice %86 {offsets = [0, 16], sizes = [8, 240], strides = [1, 1]} : vector<8x256xf32> to vector<8x240xf32>
    %198 = arith.truncf %197 : vector<8x240xf32> to vector<8x240xbf16>
    %c56_129 = arith.constant 56 : index
    %c0_130 = arith.constant 0 : index
    %199 = vector.load %arg12[%c56_129, %c0_130] : memref<72x256xbf16, #tpu.memory_space<vmem>>, vector<8x240xbf16>
    tpu.vector_store %arg12[%c56_129, %c0_130], %198 {strides = array<i32>} : memref<72x256xbf16, #tpu.memory_space<vmem>>, vector<8x240xbf16>,
    %cst_131 = arith.constant 0.000000e+00 : bf16
    %200 = vector.broadcast %cst_131 : bf16 to vector<8x16xbf16>
    %c56_132 = arith.constant 56 : index
    %c240_133 = arith.constant 240 : index
    %201 = vector.load %arg12[%c56_132, %c240_133] : memref<72x256xbf16, #tpu.memory_space<vmem>>, vector<8x16xbf16>
    tpu.vector_store %arg12[%c56_132, %c240_133], %200 {strides = array<i32>} : memref<72x256xbf16, #tpu.memory_space<vmem>>, vector<8x16xbf16>,
    %202 = vector.extract_strided_slice %86 {offsets = [0, 17], sizes = [8, 239], strides = [1, 1]} : vector<8x256xf32> to vector<8x239xf32>
    %203 = vector.extract_strided_slice %1 {offsets = [0, 0], sizes = [1, 239], strides = [1, 1]} : vector<1x256xf32> to vector<1x239xf32>
    %204 = vector.broadcast %203 : vector<1x239xf32> to vector<8x239xf32>
    %205 = arith.mulf %202, %204 : vector<8x239xf32>
    %206 = arith.truncf %205 : vector<8x239xf32> to vector<8x239xbf16>
    %c64_134 = arith.constant 64 : index
    %c0_135 = arith.constant 0 : index
    %207 = vector.load %arg12[%c64_134, %c0_135] : memref<72x256xbf16, #tpu.memory_space<vmem>>, vector<8x239xbf16>
    tpu.vector_store %arg12[%c64_134, %c0_135], %206 {strides = array<i32>} : memref<72x256xbf16, #tpu.memory_space<vmem>>, vector<8x239xbf16>,
    %cst_136 = arith.constant 0.000000e+00 : bf16
    %208 = vector.broadcast %cst_136 : bf16 to vector<8x17xbf16>
    %c64_137 = arith.constant 64 : index
    %c239_138 = arith.constant 239 : index
    %209 = vector.load %arg12[%c64_137, %c239_138] : memref<72x256xbf16, #tpu.memory_space<vmem>>, vector<8x17xbf16>
    tpu.vector_store %arg12[%c64_137, %c239_138], %208 {strides = array<i32>} : memref<72x256xbf16, #tpu.memory_space<vmem>>, vector<8x17xbf16>,
    %c0_139 = arith.constant 0 : index
    %c0_140 = arith.constant 0 : index
    %210 = vector.load %arg9[%c0_139, %c0_140] : memref<16x72xbf16, #tpu.memory_space<vmem>>, vector<16x72xbf16>
    %c0_141 = arith.constant 0 : index
    %c0_142 = arith.constant 0 : index
    %211 = vector.load %arg12[%c0_141, %c0_142] : memref<72x256xbf16, #tpu.memory_space<vmem>>, vector<72x256xbf16>
    %cst_143 = arith.constant dense<0.000000e+00> : vector<16x256xf32>
    %212 = tpu.matmul %210, %211, %cst_143 {dimension_numbers = #tpu.dot_dimension_numbers<[1], [0], [0], [1], [0, 0, 1, 1], [], []>} : vector<16x72xbf16>, vector<72x256xbf16>, vector<16x256xf32> -> vector<16x256xf32>
    %213 = arith.addf %149, %212 : vector<16x256xf32>
    %c0_144 = arith.constant 0 : index
    %c0_145 = arith.constant 0 : index
    %214 = vector.load %arg10[%c0_144, %c0_145] : memref<16x1xf32, #tpu.memory_space<vmem>>, vector<16x1xf32>
    %215 = vector.broadcast %214 : vector<16x1xf32> to vector<16x256xf32>
    %216 = arith.addf %213, %215 : vector<16x256xf32>
    %c0_146 = arith.constant 0 : index
    %c0_147 = arith.constant 0 : index
    %c0_148 = arith.constant 0 : index
    %217 = vector.load %arg11[%c0_146, %c0_147, %c0_148] : memref<1x16x256xf32, #tpu.memory_space<vmem>>, vector<1x16x256xf32>
    %218 = vector.shape_cast %217 : vector<1x16x256xf32> to vector<16x256xf32>
    %219 = vector.shape_cast %216 : vector<16x256xf32> to vector<1x16x256xf32>
    tpu.vector_store %arg11[%c0_146, %c0_147, %c0_148], %219 {strides = array<i32>} : memref<1x16x256xf32, #tpu.memory_space<vmem>>, vector<1x16x256xf32>,
    return
  }
  func.func @transform_0(%arg0: i32) -> (i32, i32, i32, i32) {
    %c0_i32 = arith.constant 0 : i32
    %c0_i32_0 = arith.constant 0 : i32
    %c0_i32_1 = arith.constant 0 : i32
    %c0_i32_2 = arith.constant 0 : i32
    return %arg0, %c0_i32, %c0_i32_0, %c0_i32_1 : i32, i32, i32, i32
  }
  func.func @transform_1(%arg0: i32) -> (i32, i32, i32, i32) {
    %c0_i32 = arith.constant 0 : i32
    %c0_i32_0 = arith.constant 0 : i32
    %c0_i32_1 = arith.constant 0 : i32
    %c0_i32_2 = arith.constant 0 : i32
    return %arg0, %c0_i32, %c0_i32_0, %c0_i32_1 : i32, i32, i32, i32
  }
  func.func @transform_2(%arg0: i32) -> (i32, i32) {
    %c0_i32 = arith.constant 0 : i32
    %c0_i32_0 = arith.constant 0 : i32
    %c0_i32_1 = arith.constant 0 : i32
    return %c0_i32, %c0_i32_0 : i32, i32
  }
  func.func @transform_3(%arg0: i32) -> (i32, i32) {
    %c0_i32 = arith.constant 0 : i32
    %c0_i32_0 = arith.constant 0 : i32
    %c0_i32_1 = arith.constant 0 : i32
    return %c0_i32, %c0_i32_0 : i32, i32
  }
  func.func @transform_4(%arg0: i32) -> (i32, i32) {
    %c0_i32 = arith.constant 0 : i32
    %c0_i32_0 = arith.constant 0 : i32
    %c0_i32_1 = arith.constant 0 : i32
    return %c0_i32, %c0_i32_0 : i32, i32
  }
  func.func @transform_5(%arg0: i32) -> (i32, i32) {
    %c0_i32 = arith.constant 0 : i32
    %c0_i32_0 = arith.constant 0 : i32
    %c0_i32_1 = arith.constant 0 : i32
    return %c0_i32, %c0_i32_0 : i32, i32
  }
  func.func @transform_6(%arg0: i32) -> (i32, i32) {
    %c0_i32 = arith.constant 0 : i32
    %c0_i32_0 = arith.constant 0 : i32
    %c0_i32_1 = arith.constant 0 : i32
    return %c0_i32, %c0_i32_0 : i32, i32
  }
  func.func @transform_7(%arg0: i32) -> (i32, i32) {
    %c0_i32 = arith.constant 0 : i32
    %c0_i32_0 = arith.constant 0 : i32
    %c0_i32_1 = arith.constant 0 : i32
    return %c0_i32, %c0_i32_0 : i32, i32
  }
  func.func @transform_8(%arg0: i32) -> (i32, i32) {
    %c0_i32 = arith.constant 0 : i32
    %c0_i32_0 = arith.constant 0 : i32
    %c0_i32_1 = arith.constant 0 : i32
    return %c0_i32, %c0_i32_0 : i32, i32
  }
  func.func @transform_9(%arg0: i32) -> (i32, i32) {
    %c0_i32 = arith.constant 0 : i32
    %c0_i32_0 = arith.constant 0 : i32
    %c0_i32_1 = arith.constant 0 : i32
    return %c0_i32, %c0_i32_0 : i32, i32
  }
  func.func @transform_10(%arg0: i32) -> (i32, i32, i32) {
    %c0_i32 = arith.constant 0 : i32
    %c0_i32_0 = arith.constant 0 : i32
    %c0_i32_1 = arith.constant 0 : i32
    return %arg0, %c0_i32, %c0_i32_0 : i32, i32, i32
  }
}

</mosaic_0001>

<bundles_post_ra>
// kernel: tpu_custom_call.1
= control target key start
LH: loop header
LB: loop body
LE: loop exit
PB: predicated region body
PF: predicated region fallthrough
CT: control target
= control target key end

     0   :  { %s4682_s0 = inlined_call_operand.hbm [shape: f32[2,8,8,8], index: 0, kind: input, shape index: {}]   ;;  %s4683_s1 = inlined_call_operand.hbm [shape: f32[2,8,16,16], index: 1, kind: input, shape index: {}]   ;;  %s4684_s2 = inlined_call_operand.vmem [shape: f32[16,8], index: 2, kind: input, shape index: {}]   ;;  %s4685_s3 = inlined_call_operand.vmem [shape: f32[8,16], index: 3, kind: input, shape index: {}]   ;;  %s4686_s4 = inlined_call_operand.vmem [shape: f32[2,256], index: 4, kind: input, shape index: {}]   ;;  %s4687_s5 = inlined_call_operand.vmem [shape: bf16[16,72], index: 5, kind: input, shape index: {}]   ;;  %s4688_s6 = inlined_call_operand.vmem [shape: f32[16,1], index: 6, kind: input, shape index: {}]   ;;  %s4689_s7 = inlined_call_operand.vmem [shape: bf16[16,72], index: 7, kind: input, shape index: {}]   ;;  %s4690_s8 = inlined_call_operand.vmem [shape: bf16[16,72], index: 8, kind: input, shape index: {}]   ;;  %s4691_s9 = inlined_call_operand.vmem [shape: f32[16,1], index: 9, kind: input, shape index: {}]   ;;  %s4692_s10 = inlined_call_operand.hbm [shape: f32[2,16,256], index: 10, kind: output, shape index: {}]  }
   0x1   :  { %4726 = sst [smem:[#allocation16_spill]] %s4682_s0 }
   0x2   :  { %15 = vsyncpa [#allocation4], 0 }
   0x3   :  { %17 = vsyncpa [#allocation4 + $0x1], 0 }
   0x4   :  { %18 = vsyncpa [#allocation7], 0 }
   0x5   :  { %20 = vsyncpa [#allocation7 + $0x1], 0 }
   0x6   :  { %21 = vsyncpa [#allocation5], 0 }
   0x7   :  { %23 = vsyncpa [#allocation5 + $0x1], 0  ;;  %s3832_s13 = smov 0   ;;  %s3834_s14 = smov 0  }
   0x8   :  { %s3836_s15 = smov 0   ;;  %s3838_s16 = smov 0  }
   0x9 LB: > { %4727 = sst [smem:[#allocation12_spill]] %s3747_s15  ;;  %s3853_s17 = sadd.s32 4294967295, %s3751_s16   ;;  %s3751_s16 = sphi %s3838_s16, %s4812_s16   ;;  %s3747_s15 = sphi %s3836_s15, %s4814_s15   ;;  %s3743_s14 = sphi %s3834_s14, %s4816_s14   ;;  %s3739_s13 = sphi %s3832_s13, %s4815_s13  }
   0xa   : > { %s3272_s18 = sadd.s32 4294967294, %s3751_s16   ;;  %s3857_s19 = sadd.s32 1, %s3751_s16  }
   0xb   : > { %4728 = sst [smem:[#allocation13_spill]] %s3857_s19  ;;  %s36_s20 = sadd.s32 1, %s3747_s15 }
   0xc   : > { %s33_s21 = ssub.s32 %s3751_s16, %s3857_s19  ;;  %p43_p0 = scmp.ne.s32.totalorder %s3747_s15, %s3743_s14 }
   0xd   : > { %p34_p1 = scmp.eq.s32.totalorder %s33_s21, 0  ;;  %p44_p2 = scmp.eq.s32.totalorder %s3751_s16, 0 }
   0xe   : > { %p49_p3 = scmp.ne.s32.totalorder %s3743_s14, %s3739_s13  ;;  %p50_p4 = scmp.eq.s32.totalorder %s3853_s17, 0 }
   0xf   : > { %s3869_s22 = scalar_select %p34_p1, %s3747_s15, %s36_s20  }
  0x10   : > { %p3871_p5 = por %p44_p2, %p43_p0  ;;  %p3875_p6 = por %p50_p4, %p49_p3 }
  0x11   : > { %4729 = sst [smem:[#allocation14_spill]] %s3869_s22  ;;  %p267_p7 = scmp.eq.s32.totalorder %s3853_s17, 1 }
  0x12   : > { %s4731_s24 = scalar_select %p3875_p6, 1, 0 }
  0x13   : > { %p273_p8 = scmp.eq.s32.totalorder %s3272_s18, 1  ;;  %p3540_p10 = scmp.lt.s32.totalorder %s3751_s16, 2 }
  0x14   : > { %p3882_p11 = por %p267_p7, %p43_p0  ;;  %s3891_s27 = sand.u32 1, %s3747_s15  }
  0x15   : > { %p3886_p12 = por %p273_p8, %p49_p3  ;;  %s3375_s28 = sshll.u32 %s3751_s16, 10 }
  0x16   : > { %s4732_s25 = scalar_select %p3882_p11, 1, 0 }
  0x17   : > { %s4733_s26 = scalar_select %p3886_p12, 1, 0 }
  0x18   : > { %s3275_s29 = sshll.u32 %s3891_s27, 6  ;;  %s4735_s0 = sld [smem:[#allocation16_spill]] }
  0x19   : > { %4734 = sst [smem:[#allocation15_spill]] %s4733_s26  ;;  %s321_s18 = scalar_lea.vmem [#allocation3], %s3275_s29 }
  0x1a   : > { %s328_s20 = sshll.u32 %s321_s18, 4  ;;  %p3902_p13 = pnand %p3540_p10, %p3871_p5  ;;  %s3906_s20 = int_to_ptr.vmem [resolvable:$true] %s328_s20 }
  0x1b   : > { %s318_s22 = scalar_lea.sflag [#allocation4], %s3891_s27 }
  0x1c   : > { %p3623_p1 = pneg %p3902_p13 }
  0x1e   : > { %s3898_s12 = scalar_lea.hbm %s4735_s0, %s3375_s28  ;;  %s3626_s23 = scalar_lea.hbm %s4735_s0, 2048 }
  0x1f   : > { %s3621_s15 = scalar_lea.hbm %s3898_s12, 1024  ;;  %p3627_p4 = scmp.lt.u32.totalorder %s3898_s12, %s4735_s0 }
  0x20   : > { %p3622_p0 = scmp.ne.s32.totalorder %s3898_s12, %s3621_s15  ;;  %p3628_p5 = scmp.lt.u32.totalorder %s3626_s23, %s3621_s15 }
  0x21   : > { %p3630_p8 = scmp.lt.u32.totalorder %s3621_s15, %s3898_s12 }
  0x22   : > { %p3624_p2 = pnand %p3623_p1, %p3622_p0  ;;  %p3629_p7 = por %p3628_p5, %p3627_p4 }
  0x24   : > { %p3625_p3 = pneg %p3624_p2  ;;  %p3631_p10 = por %p3630_p8, %p3629_p7 }
  0x26   : > { %p3632_p9 = pnand %p3631_p10, %p3625_p3 }
  0x28   : > { %3635 = shalt.err (!%p3632_p9)
}
  0x29   : > { %s3636_s18 = scalar_lea.vmem %s3906_s20, 1024  ;;  %s3753_s28 = smov [#allocation3]  }
  0x2a   : > { %p3637_p0 = scmp.ne.s32.totalorder %s3906_s20, %s3636_s18  ;;  %s3641_s29 = sshll.u32 %s3753_s28, 4  ;;  %s3642_s29 = int_to_ptr.vmem [resolvable:$false] %s3641_s29 }
  0x2b   : > { %s3643_s30 = scalar_lea.vmem %s3642_s29, 2048  ;;  %p3644_p11 = scmp.lt.s32.totalorder %s3906_s20, %s3642_s29 }
  0x2c   : > { %p3639_p2 = pnand %p3637_p0, %p3623_p1  ;;  %p3645_p4 = scmp.lt.s32.totalorder %s3643_s30, %s3636_s18 }
  0x2e   : > { %p3640_p12 = pneg %p3639_p2  ;;  %p3646_p5 = por %p3645_p4, %p3644_p11 }
  0x30   : > { %p3647_p7 = pnand %p3646_p5, %p3640_p12 }
  0x32   : > { %3650 = shalt.err (!%p3647_p7)
}
  0x33   : > { %s3754_s15 = smov 128   ;;  %s3755_s23 = smov 8  }
  0x34   : > { %3532 = dma.hbm_to_vmem [thread:$0]  (!%p3902_p13), %s3898_s12, 1024, %s3906_s20, %s318_s22, %s3754_s15, %s3754_s15, %s3755_s23  }
  0x35   : > { %p3281_p9 = scmp.ge.s32.totalorder %s3751_s16, 1  ;;  %p357_p11 = scmp.lt.s32.totalorder %s3751_s16, 3 }
  0x36   : > { %s3278_s11 = sshll.u32 %s3891_s27, 7  ;;  %s3376_s28 = sshll.u32 %s3751_s16, 11 }
  0x37   : > { %p3942_p12 = pnand %p3281_p9, %p357_p11  ;;  %s342_s29 = scalar_lea.vmem [#allocation6], %s3278_s11 }
  0x38   : > { %s349_s30 = sshll.u32 %s342_s29, 4  ;;  %s3950_s26 = scalar_lea.hbm %s4683_s1, %s3376_s28  ;;  %s3952_s30 = int_to_ptr.vmem [resolvable:$true] %s349_s30 }
  0x39   : > { %s339_s22 = scalar_lea.sflag [#allocation7], %s3891_s27  ;;  %s3651_s12 = scalar_lea.hbm %s3950_s26, 2048 }
  0x3a   : > { %p3652_p3 = scmp.ne.s32.totalorder %s3950_s26, %s3651_s12  ;;  %s3656_s29 = scalar_lea.hbm %s4683_s1, 4096 }
  0x3b   : > { %p3657_p0 = scmp.lt.u32.totalorder %s3950_s26, %s4683_s1  ;;  %p3658_p2 = scmp.lt.u32.totalorder %s3656_s29, %s3651_s12 }
  0x3c   : > { %p3654_p8 = pnand %p3652_p3, %p3623_p1  ;;  %p3660_p5 = scmp.lt.u32.totalorder %s3651_s12, %s3950_s26 }
  0x3d   : > { %p3659_p4 = por %p3658_p2, %p3657_p0 }
  0x3e   : > { %p3655_p10 = pneg %p3654_p8 }
  0x3f   : > { %p3661_p7 = por %p3660_p5, %p3659_p4 }
  0x41   : > { %p3662_p9 = pnand %p3661_p7, %p3655_p10 }
  0x43   : > { %3665 = shalt.err (!%p3662_p9)
}
  0x44   : > { %s3666_s28 = scalar_lea.vmem %s3952_s30, 2048  ;;  %s3756_s20 = smov [#allocation6]  }
  0x45   : > { %p3667_p11 = scmp.ne.s32.totalorder %s3952_s30, %s3666_s28  ;;  %s3671_s11 = sshll.u32 %s3756_s20, 4  ;;  %s3672_s11 = int_to_ptr.vmem [resolvable:$false] %s3671_s11 }
  0x46   : > { %s3673_s0 = scalar_lea.vmem %s3672_s11, 4096  ;;  %p3674_p6 = scmp.lt.s32.totalorder %s3952_s30, %s3672_s11 }
  0x47   : > { %p3669_p3 = pnand %p3667_p11, %p3623_p1  ;;  %p3675_p0 = scmp.lt.s32.totalorder %s3673_s0, %s3666_s28 }
  0x49   : > { %p3670_p8 = pneg %p3669_p3  ;;  %p3676_p2 = por %p3675_p0, %p3674_p6 }
  0x4b   : > { %p3677_p4 = pnand %p3676_p2, %p3670_p8 }
  0x4d   : > { %3680 = shalt.err (!%p3677_p4)
}
  0x4e   : > { %3535 = dma.hbm_to_vmem [thread:$0]  (!%p3902_p13), %s3950_s26, 2048, %s3952_s30, %s339_s22, %s3754_s15, %s3754_s15, %s3755_s23  }
  0x4f   : > { %361 = sbr.rel (%p3942_p12) target bundleno = 1490 (0x5d2), region = 60  ;;  %s3986_s12 = sand.u32 (!%p3942_p12), 1, %s3743_s14  }
  0x50   : > { %s3282_s29 = sshll.u32 (!%p3942_p12), %s3986_s12, 6  ;;  %s364_s19 = scalar_lea.sflag (!%p3942_p12), [#allocation4], %s3986_s12 }
  0x51   : > { %s3990_s21 = scalar_lea.vmem (!%p3942_p12), [#allocation3], %s3282_s29  ;;  %p4738_p6 = scmp.ne.s32.totalorder (!%p3942_p12), %s4731_s24, 0 }
  0x56   : > { %3726 = dma.done.wait (%p4738_p6), %s364_s19, 1024  }
  0x57   : > { %3728 = vsyncadd (%p4738_p6), %s364_s19, 4294966272  ;;  %s3283_s26 = sshll.u32 %s3986_s12, 7  ;;  %s373_s27 = scalar_lea.sflag [#allocation7], %s3986_s12 }
  0x58   : > { %s3998_s15 = scalar_lea.vmem [#allocation6], %s3283_s26 }
  0x59   : > { %3730 = dma.done.wait (%p4738_p6), %s373_s27, 2048  }
  0x5a   : > { %3732 = vsyncadd (%p4738_p6), %s373_s27, 4294965248  ;;  %v3757_v0 = vmov 0.0   ;;  %vm3758_vm0 = vmmov 0   ;;  %vm433_vm1 = vcmask 64512   ;;  %v432_v1 = vld [vmem:[%s4685_s3] sm:$0xff]  ;;  %v422_v2 = vld [vmem:[%s3990_s21] sm:$0xff]  ;;  %v1629_v28 = vlaneseq }
  0x5b   : > { %3439 = vmatprep.subr.mxu0 %v3757_v0  ;;  %3441 = vmatprep.mubr.msk.f32.mxu0 %vm3758_vm0, %v3757_v0  ;;  %v427_v3 = vld [vmem:[%s3990_s21 + $0x28] sm:$0xff]  ;;  %v429_v5 = vld [vmem:[%s3990_s21 + $0x38] sm:$0xff]  ;;  %v424_v6 = vld [vmem:[%s3990_s21 + $0x10] sm:$0xff]  ;;  %s3759_s0 = smov 111   ;;  %v3760_v37 = vmov 1983009808  }
  0x5c   : > { %3464 = vmatprep.subr.mxu1 %v3757_v0  ;;  %3466 = vmatprep.mubr.msk.f32.mxu1 %vm3758_vm0, %v3757_v0  ;;  %v423_v4 = vld [vmem:[%s3990_s21 + $0x8] sm:$0xff]  ;;  %v425_v7 = vld [vmem:[%s3990_s21 + $0x18] sm:$0xff]  ;;  %v426_v8 = vld [vmem:[%s3990_s21 + $0x20] sm:$0xff]  ;;  %v4053_v29 = vshrl.u32 %v1629_v28, 7  ;;  %v1627_v38 = vunpack.c.l.s4 %v3760_v37  ;;  %v3761_v41 = vmov 1934713408  }
  0x5d   : > { %3440 = vmatpush3.msra.mxu0 %v432_v1  ;;  %3465 = vmatpush3.msra.mxu1 %v432_v1  ;;  %v428_v9 = vld [vmem:[%s3990_s21 + $0x30] sm:$0xff]  ;;  %v430_v10 = vld [vmem:[%s4684_s2] sm:$0xff]  ;;  %v431_v12 = vld [vmem:[%s4684_s2 + $0x8] sm:$0xff]  ;;  %v1691_v42 = vunpack.c.l.s4 %v3761_v41  ;;  %s3762_s29 = smov 32   ;;  %s3763_s19 = smov 16   ;;  %vm4706_vm2 = vcmask 130048  }
  0x5e   : > { %3442 = vmatmul.mubr.msk.f32.vlgmr.msra.gmra.mrb[0].mxu0 %vm433_vm1, %v422_v2  ;;  %3444 = vmatprep.subr.mxu0 %v3757_v0  ;;  %v1976_v30 = vsub.s32 0, %v4053_v29  ;;  %v419_v31 = vld [vmem:[%s4686_s4] ss:$2 sm:$0x3]  ;;  %v1980_v33 = vsub.s32 1, %v4053_v29  ;;  %v1628_v43 = vunpack.c.0.s8 %v1627_v38  ;;  %s3764_s27 = smov 48  }
  0x5f   : > { %3445 = vmatpush3.msra.mxu0 %v432_v1  ;;  %3446 = vmatprep.mubr.msk.f32.mxu0 %vm3758_vm0, %v3757_v0  ;;  %v1692_v50 = vunpack.c.0.s8 %v1691_v42  ;;  %s3765_s23 = smov 64   ;;  %s3766_s18 = smov 113   ;;  %vm4705_vm3 = vcmask 261120   ;;  %vm4704_vm4 = vcmask 392192   ;;  %vm4703_vm5 = vcmask 523264  }
  0x60   : > { %3449 = vmatprep.subr.mxu0 %v3757_v0  ;;  %3467 = vmatmul.mubr.msk.f32.vlgmr.msra.gmra.mrb[0].mxu1 %vm433_vm1, %v427_v3  ;;  %v4061_v32 = vrot.slane %v419_v31, %v1976_v30  ;;  %v4068_v34 = vrot.slane %v419_v31, %v1980_v33  ;;  %v4071_v51 = vsub.s32 %v1628_v43, %v4053_v29  ;;  %s3767_s24 = smov 80   ;;  %s3768_s30 = smov 96   ;;  %vm4702_vm6 = vcmask 654336  }
  0x61   : > { %3474 = vmatprep.subr.mxu1 %v3757_v0  ;;  %3476 = vmatprep.mubr.msk.f32.mxu1 %vm3758_vm0, %v3757_v0  ;;  %v4074_v58 = vsub.s32 %v1692_v50, %v4053_v29  ;;  %s3769_s22 = smov 112   ;;  %s4699_s28 = smov 127   ;;  %v3773_v29 = vmov 0   ;;  %vm4701_vm7 = vcmask 785408   ;;  %vm4715_vm8 = vcmask 908288  }
  0x62   : > { %3447 = vmatmul.mubr.msk.f32.vlgmr.msra.gmra.mrb[2].mxu0 %vm433_vm1, %v423_v4  ;;  %3475 = vmatpush3.msra.mxu1 %v432_v1  ;;  %s3771_s20 = smov 1   ;;  %s3772_s11 = smov 15   ;;  %vm4723_vm9 = vcmask 916480   ;;  %vm4722_vm10 = vcmask 924672   ;;  %vm4713_vm11 = vcmask 1039360   ;;  %vm4714_vm12 = vcmask 7168  }
  0x63   : > { %3450 = vmatpush3.msra.mxu0 %v432_v1  ;;  %3451 = vmatprep.mubr.msk.f32.mxu0 %vm3758_vm0, %v3757_v0  ;;  %s3774_s21 = smov 17   ;;  %vm4710_vm13 = vcmask 121856   ;;  %vm4707_vm14 = vcmask 138240   ;;  %vm2006_vm15 = vcmask 1047556   ;;  %s3284_s26 = sshll.u32 %s3986_s12, 5 }
  0x64   : > { %3454 = vmatprep.subr.mxu0 %v3757_v0  ;;  %3477 = vmatmul.mubr.msk.f32.vlgmr.msra.gmra.mrb[2].mxu1 %vm433_vm1, %v429_v5  ;;  %p4808_p1 = scmp.ne.s32.totalorder %s4732_s25, 0 }
  0x65   : > { %3486 = vmatprep.mubr.msk.f32.mxu1 %vm433_vm1, %v430_v10  ;;  %1982 = vrot.lane.b32.xlu0 %v4061_v32, %s3759_s0 }
  0x66   : > { %3452 = vmatmul.mubr.msk.f32.vlgmr.msra.gmra.mrb[4].mxu0 %vm433_vm1, %v424_v6  ;;  %3595 = vset.pattern.permute.xlu0 %v3773_v29 }
  0x67   : > { %3455 = vmatpush3.msra.mxu0 %v432_v1  ;;  %3456 = vmatprep.mubr.msk.f32.mxu0 %vm3758_vm0, %v3757_v0 }
  0x68   : > { %3459 = vmatprep.subr.mxu0 %v3757_v0  ;;  %3596 = vset.pattern.permute.xlu1 %v3773_v29 }
  0x6a   : > { %3457 = vmatmul.mubr.msk.f32.vlgmr.msra.gmra.mrb[6].mxu0 %vm433_vm1, %v425_v7 }
  0x6b   : > { %3460 = vmatpush3.msra.mxu0 %v432_v1  ;;  %3461 = vmatprep.mubr.msk.f32.mxu0 %vm3758_vm0, %v3757_v0 }
  0x6c   : > { %3469 = vmatprep.subr.mxu0 %v3757_v0 }
  0x6e   : > { %3462 = vmatmul.mubr.msk.f32.vlgmr.msra.gmra.mrb[8].mxu0 %vm433_vm1, %v426_v8 }
  0x6f   : > { %3470 = vmatpush3.msra.mxu0 %v432_v1  ;;  %3471 = vmatprep.mubr.msk.f32.mxu0 %vm3758_vm0, %v3757_v0  ;;  %vm2024_vm0 = vcmask 1043584  }
  0x72   : > { %3472 = vmatmul.mubr.msk.f32.vlgmr.msra.gmra.mrb[10].mxu0 %vm433_vm1, %v428_v9 }
  0x73   : > { %3481 = vmatprep.mubr.msk.f32.mxu0 %vm433_vm1, %v430_v10 }
 0x131   : > { %v503_v11 = vpop.f32.mrb[0].mxu0 }
 0x132   : > { %v3443_v13 = vpop.f32.mrb[1].mxu0  ;;  %3479 = vmatprep.subr.mxu0 %v503_v11 }
 0x133   : > { %3480 = vmatpush3.msra.mxu0 %v503_v11  ;;  %v868_v14 = vpop.f32.mrb[0].mxu1 }
 0x134   : > { %3482 = vmatmul.mubr.msk.f32.vlgmr.msra.gmra.mrb[12].mxu0 %vm433_vm1, %v431_v12  ;;  %v3468_v15 = vpop.f32.mrb[1].mxu1 }
 0x135   : > { %v576_v16 = vpop.f32.mrb[2].mxu0  ;;  %3491 = vmatprep.mubr.msk.f32.mxu0 %vm433_vm1, %v430_v10 }
 0x136   : > { %v3448_v17 = vpop.f32.mrb[3].mxu0  ;;  %3484 = vmatprep.subr.mxu1 %v576_v16 }
 0x137   : > { %3485 = vmatpush3.msra.mxu1 %v576_v16  ;;  %v1014_v18 = vpop.f32.mrb[2].mxu1 }
 0x138   : > { %3487 = vmatmul.mubr.msk.f32.vlgmr.msra.gmra.mrb[4].mxu1 %vm433_vm1, %v431_v12  ;;  %v3478_v19 = vpop.f32.mrb[3].mxu1 }
 0x139   : > { %v649_v20 = vpop.f32.mrb[4].mxu0  ;;  %3496 = vmatprep.mubr.msk.f32.mxu1 %vm433_vm1, %v430_v10 }
 0x13a   : > { %v3453_v21 = vpop.f32.mrb[5].mxu0  ;;  %3489 = vmatprep.subr.mxu0 %v649_v20 }
 0x13b   : > { %3490 = vmatpush3.msra.mxu0 %v649_v20 }
 0x13c   : > { %3492 = vmatmul.mubr.msk.f32.vlgmr.msra.gmra.mrb[14].mxu0 %vm433_vm1, %v431_v12 }
 0x13d   : > { %v722_v22 = vpop.f32.mrb[6].mxu0  ;;  %3501 = vmatprep.mubr.msk.f32.mxu0 %vm433_vm1, %v430_v10 }
 0x13e   : > { %v3458_v23 = vpop.f32.mrb[7].mxu0  ;;  %3494 = vmatprep.subr.mxu1 %v722_v22 }
 0x13f   : > { %3495 = vmatpush3.msra.mxu1 %v722_v22 }
 0x140   : > { %3497 = vmatmul.mubr.msk.f32.vlgmr.msra.gmra.mrb[6].mxu1 %vm433_vm1, %v431_v12  ;;  %3504 = vmatprep.subr.mxu1 %v868_v14 }
 0x141   : > { %v795_v24 = vpop.f32.mrb[8].mxu0  ;;  %3505 = vmatpush3.msra.mxu1 %v868_v14  ;;  %3506 = vmatprep.mubr.msk.f32.mxu1 %vm433_vm1, %v430_v10 }
 0x142   : > { %v3463_v25 = vpop.f32.mrb[9].mxu0  ;;  %3499 = vmatprep.subr.mxu0 %v795_v24  ;;  %3514 = vmatprep.subr.mxu1 %v1014_v18 }
 0x143   : > { %3500 = vmatpush3.msra.mxu0 %v795_v24 }
 0x144   : > { %3502 = vmatmul.mubr.msk.f32.vlgmr.msra.gmra.mrb[16].mxu0 %vm433_vm1, %v431_v12  ;;  %3507 = vmatmul.mubr.msk.f32.vlgmr.msra.gmra.mrb[8].mxu1 %vm433_vm1, %v431_v12 }
 0x145   : > { %v941_v26 = vpop.f32.mrb[10].mxu0  ;;  %3515 = vmatpush3.msra.mxu1 %v1014_v18  ;;  %3511 = vmatprep.mubr.msk.f32.mxu0 %vm433_vm1, %v430_v10 }
 0x146   : > { %v3473_v27 = vpop.f32.mrb[11].mxu0  ;;  %3509 = vmatprep.subr.mxu0 %v941_v26  ;;  %3516 = vmatprep.mubr.msk.f32.mxu1 %vm433_vm1, %v430_v10 }
 0x147   : > { %3510 = vmatpush3.msra.mxu0 %v941_v26 }
 0x148   : > { %3512 = vmatmul.mubr.msk.f32.vlgmr.msra.gmra.mrb[18].mxu0 %vm433_vm1, %v431_v12  ;;  %3517 = vmatmul.mubr.msk.f32.vlgmr.msra.gmra.mrb[10].mxu1 %vm433_vm1, %v431_v12  ;;  %vm2005_vm1 = vcmask 1043592  }
 0x149   : > { %2307 = vmatprep.mubr.bf16.mxu0 %v3773_v29  ;;  %3029 = vmatprep.mubr.bf16.mxu1 %v3773_v29 }
 0x207   : > { %v3483_v35 = vpop.f32.mrb[12].mxu0 }
 0x208   : > { %v1090_v36 = vpop.f32.mrb[13].mxu0 }
 0x20b   : > { %v3488_v39 = vpop.f32.mrb[4].mxu1 }
 0x20c   : > { %v1165_v40 = vpop.f32.mrb[5].mxu1 }
 0x20f   : > { %v3493_v44 = vpop.f32.mrb[14].mxu0 }
 0x210   : > { %v1760_v45 = vcombine.low %v3483_v35, %v3493_v44  ;;  %v1761_v46 = vcombine.high %v3483_v35, %v3493_v44  ;;  %v1240_v47 = vpop.f32.mrb[15].mxu0 }
 0x211   : > { %v1624_v48 = vcombine.low %v1090_v36, %v1240_v47  ;;  %v1625_v49 = vcombine.high %v1090_v36, %v1240_v47 }
 0x212   : > { %v1768_v59 = vrot.slane %v1760_v45, %v4071_v51  ;;  %v1775_v60 = vrot.slane %v1761_v46, %v4071_v51 }
 0x213   : > { %v3498_v52 = vpop.f32.mrb[6].mxu1  ;;  %v1632_v63 = vrot.slane %v1624_v48, %v4071_v51  ;;  %v1639_v0 = vrot.slane %v1625_v49, %v4071_v51 }
 0x214   : > { %v1776_v53 = vcombine.low %v3488_v39, %v3498_v52  ;;  %v1777_v54 = vcombine.high %v3488_v39, %v3498_v52  ;;  %v1315_v55 = vpop.f32.mrb[7].mxu1 }
 0x215   : > { %v1640_v56 = vcombine.low %v1165_v40, %v1315_v55  ;;  %v1641_v57 = vcombine.high %v1165_v40, %v1315_v55 }
 0x216   : > { %v1784_v61 = vrot.slane %v1776_v53, %v4071_v51  ;;  %v1791_v62 = vrot.slane %v1777_v54, %v4071_v51 }
 0x217   : > { %v1648_v1 = vrot.slane %v1640_v56, %v4071_v51  ;;  %v1655_v2 = vrot.slane %v1641_v57, %v4071_v51  ;;  %v3503_v3 = vpop.f32.mrb[16].mxu0  ;;  %v3508_v4 = vpop.f32.mrb[8].mxu1 }
 0x218   : > { %v1824_v5 = vcombine.low %v1768_v59, %v1784_v61  ;;  %v1840_v6 = vcombine.low %v1775_v60, %v1791_v62  ;;  %v1841_v7 = vcombine.high %v1775_v60, %v1791_v62  ;;  %v1390_v8 = vpop.f32.mrb[17].mxu0  ;;  %v1465_v9 = vpop.f32.mrb[9].mxu1  ;;  %v1825_v10 = vcombine.high %v1768_v59, %v1784_v61 }
 0x219   : > { %v1688_v11 = vcombine.low %v1632_v63, %v1648_v1  ;;  %v1689_v12 = vcombine.high %v1632_v63, %v1648_v1  ;;  %v1704_v13 = vcombine.low %v1639_v0, %v1655_v2  ;;  %v1705_v14 = vcombine.high %v1639_v0, %v1655_v2 }
 0x21a   : > { %v4085_v15 = vrot.slane %v1825_v10, %v4074_v58  ;;  %v4088_v16 = vrot.slane %v1824_v5, %v4074_v58  ;;  %v4091_v17 = vrot.slane %v1840_v6, %v4074_v58  ;;  %v4094_v18 = vrot.slane %v1841_v7, %v4074_v58 }
 0x21b   : > { %v3513_v19 = vpop.f32.mrb[18].mxu0  ;;  %v3518_v20 = vpop.f32.mrb[10].mxu1  ;;  %v4097_v21 = vrot.slane %v1688_v11, %v4074_v58  ;;  %v4100_v22 = vrot.slane %v1689_v12, %v4074_v58  ;;  %v4103_v23 = vrot.slane %v1704_v13, %v4074_v58  ;;  %v4106_v24 = vrot.slane %v1705_v14, %v4074_v58  ;;  %v3285_v13 = vld [vmem:[%s4686_s4 + $0x1] ss:$2 sm:$0x3] }
 0x21c   : > { %v1792_v25 = vcombine.low %v3503_v3, %v3513_v19  ;;  %v1793_v26 = vcombine.high %v3503_v3, %v3513_v19  ;;  %v1808_v27 = vcombine.low %v3508_v4, %v3518_v20  ;;  %v1809_v28 = vcombine.high %v3508_v4, %v3518_v20  ;;  %v1540_v31 = vpop.f32.mrb[19].mxu0  ;;  %v1615_v35 = vpop.f32.mrb[11].mxu1 }
 0x21d   : > { %v1656_v36 = vcombine.low %v1390_v8, %v1540_v31  ;;  %v1657_v37 = vcombine.high %v1390_v8, %v1540_v31  ;;  %v1672_v38 = vcombine.low %v1465_v9, %v1615_v35  ;;  %v1673_v39 = vcombine.high %v1465_v9, %v1615_v35 }
 0x21e   : > { %v1800_v40 = vrot.slane %v1792_v25, %v4071_v51  ;;  %v1807_v41 = vrot.slane %v1793_v26, %v4071_v51  ;;  %v1816_v42 = vrot.slane %v1808_v27, %v4071_v51  ;;  %v1823_v43 = vrot.slane %v1809_v28, %v4071_v51 }
 0x21f   : > { %v1664_v44 = vrot.slane %v1656_v36, %v4071_v51  ;;  %v1671_v45 = vrot.slane %v1657_v37, %v4071_v51  ;;  %v1680_v46 = vrot.slane %v1672_v38, %v4071_v51  ;;  %v1687_v47 = vrot.slane %v1673_v39, %v4071_v51 }
 0x220   : > { %v1856_v48 = vcombine.low %v1800_v40, %v1816_v42  ;;  %v1872_v49 = vcombine.low %v1807_v41, %v1823_v43  ;;  %v1873_v50 = vcombine.high %v1807_v41, %v1823_v43  ;;  %v1857_v52 = vcombine.high %v1800_v40, %v1816_v42 }
 0x221   : > { %v1720_v53 = vcombine.low %v1664_v44, %v1680_v46  ;;  %v1721_v54 = vcombine.high %v1664_v44, %v1680_v46  ;;  %v1736_v55 = vcombine.low %v1671_v45, %v1687_v47  ;;  %v1737_v56 = vcombine.high %v1671_v45, %v1687_v47 }
 0x222   : > { %v1871_v57 = vrot.slane %v1857_v52, %v4074_v58  ;;  %v4118_v59 = vrot.slane %v1856_v48, %v4074_v58  ;;  %v1880_v60 = vrot.slane %v1872_v49, %v4074_v58  ;;  %v1887_v61 = vrot.slane %v1873_v50, %v4074_v58 }
 0x223   : > { %v4123_v62 = vrot.slane %v1720_v53, %v4074_v58  ;;  %v1735_v63 = vrot.slane %v1721_v54, %v4074_v58  ;;  %v1744_v0 = vrot.slane %v1736_v55, %v4074_v58  ;;  %v1751_v1 = vrot.slane %v1737_v56, %v4074_v58 }
 0x224   : > { %v1890_v2 = vcombine.low %v4085_v15, %v1871_v57  ;;  %v1889_v3 = vcombine.high %v4088_v16, %v4118_v59  ;;  %v1891_v4 = vcombine.high %v4085_v15, %v1871_v57  ;;  %v1892_v5 = vcombine.low %v4091_v17, %v1880_v60 }
 0x225   : > { %v1753_v6 = vcombine.high %v4097_v21, %v4123_v62  ;;  %v1893_v7 = vcombine.high %v4091_v17, %v1880_v60  ;;  %v1755_v8 = vcombine.high %v4100_v22, %v1735_v63  ;;  %v1894_v9 = vcombine.low %v4094_v18, %v1887_v61 }
 0x226   : > { %1929 = vrot.lane.b32.xlu1 %v1890_v2, %s3762_s29  ;;  %1925 = vrot.lane.b32.xlu0 %v1889_v3, %s3763_s19  ;;  %v1756_v10 = vcombine.low %v4103_v23, %v1744_v0  ;;  %v1895_v11 = vcombine.high %v4094_v18, %v1887_v61  ;;  %v1757_v12 = vcombine.high %v4103_v23, %v1744_v0 }
 0x227   : > { %v1754_v14 = vcombine.low %v4100_v22, %v1735_v63  ;;  %v1758_v15 = vcombine.low %v4106_v24, %v1751_v1  ;;  %v1759_v17 = vcombine.high %v4106_v24, %v1751_v1  ;;  %v1888_v19 = vcombine.low %v4088_v16, %v4118_v59 }
 0x228   : > { %v1752_v20 = vcombine.low %v4097_v21, %v4123_v62  ;;  %v2033_v18 = vrot.slane %v3285_v13, %v1976_v30  ;;  %v2037_v30 = vrot.slane %v3285_v13, %v1980_v33  ;;  %v1983_v33 = vpop.permute.xlu0 %1982 }
 0x22a   : > { %1933 = vrot.lane.b32.xlu1 %v1891_v4, %s3764_s27  ;;  %1897 = vrot.lane.b32.xlu0 %v1753_v6, %s3763_s19 }
 0x22e   : > { %1937 = vrot.lane.b32.xlu1 %v1892_v5, %s3765_s23  ;;  %2038 = vrot.lane.b32.xlu0 %v2033_v18, %s3766_s18 }
 0x232   : > { %1941 = vrot.lane.b32.xlu1 %v1893_v7, %s3767_s24  ;;  %1905 = vrot.lane.b32.xlu0 %v1755_v8, %s3764_s27 }
 0x236   : > { %1945 = vrot.lane.b32.xlu1 %v1894_v9, %s3768_s30  ;;  %1909 = vrot.lane.b32.xlu0 %v1756_v10, %s3765_s23 }
 0x23a   : > { %1949 = vrot.lane.b32.xlu1 %v1895_v11, %s3769_s22  ;;  %1913 = vrot.lane.b32.xlu0 %v1757_v12, %s3767_s24 }
 0x23e   : > { %1901 = vrot.lane.b32.xlu1 %v1754_v14, %s3762_s29  ;;  %1917 = vrot.lane.b32.xlu0 %v1758_v15, %s3768_s30 }
 0x242   : > { %1984 = vrot.lane.b32.xlu1 %v4068_v34, %s3759_s0  ;;  %1921 = vrot.lane.b32.xlu0 %v1759_v17, %s3769_s22 }
 0x246   : > { %2040 = vrot.lane.b32.xlu1 %v2037_v30, %s3766_s18  ;;  %2066 = vrot.lane.b32.xlu0 %v4061_v32, %s4699_s28 }
 0x24a   : > { %2068 = vrot.lane.b32.xlu1 %v4068_v34, %s4699_s28  ;;  %2096 = vrot.lane.b32.xlu0 %v2033_v18, %s3771_s20 }
 0x24e   : > { %2098 = vrot.lane.b32.xlu1 %v2037_v30, %s3771_s20  ;;  %2125 = vrot.lane.b32.xlu0 %v4061_v32, %s3772_s11 }
 0x252   : > { %2127 = vrot.lane.b32.xlu1 %v4068_v34, %s3772_s11  ;;  %2164 = vrot.lane.b32.xlu0 %v2033_v18, %s3774_s21 }
 0x256   : > { %2166 = vrot.lane.b32.xlu1 %v2037_v30, %s3774_s21 }
 0x298   : > { %v1930_v16 = vpop.permute.xlu1 %1929  ;;  %v1926_v32 = vpop.permute.xlu0 %1925 }
 0x299   : > { %v1966_v34 = vsel %vm4706_vm2, %v1888_v19, %v1926_v32 }
 0x29a   : > { %v1967_v39 = vsel %vm4705_vm3, %v1966_v34, %v1930_v16 }
 0x29c   : > { %v1934_v21 = vpop.permute.xlu1 %1933  ;;  %v1898_v22 = vpop.permute.xlu0 %1897 }
 0x29d   : > { %v1953_v36 = vsel %vm4706_vm2, %v1752_v20, %v1898_v22  ;;  %v1968_v41 = vsel %vm4704_vm4, %v1967_v39, %v1934_v21  ;;  %v2203_v22 = vld [vmem:[%s4688_s6] sm:$0xff] }
 0x2a0   : > { %v1938_v23 = vpop.permute.xlu1 %1937  ;;  %v2039_v24 = vpop.permute.xlu0 %2038 }
 0x2a1   : > { %v1969_v43 = vsel %vm4703_vm5, %v1968_v41, %v1938_v23  ;;  %v2318_v23 = vld [vmem:[%s3998_s15] sm:$0xff] }
 0x2a4   : > { %v1942_v25 = vpop.permute.xlu1 %1941  ;;  %v1906_v26 = vpop.permute.xlu0 %1905 }
 0x2a5   : > { %v1970_v45 = vsel %vm4702_vm6, %v1969_v43, %v1942_v25  ;;  %v2322_v25 = vld [vmem:[%s3998_s15 + $0x20] sm:$0xff] }
 0x2a6   : > { %v2334_v34 = vcombine.low %v2318_v23, %v2322_v25 }
 0x2a8   : > { %v1946_v27 = vpop.permute.xlu1 %1945  ;;  %v1910_v28 = vpop.permute.xlu0 %1909  ;;  %v2342_v43 = vrot.slane %v2334_v34, %v4071_v51 }
 0x2a9   : > { %v1971_v49 = vsel %vm4701_vm7, %v1970_v45, %v1946_v27  ;;  %v2326_v27 = vld [vmem:[%s3998_s15 + $0x40] sm:$0xff] }
 0x2ac   : > { %v1950_v31 = vpop.permute.xlu1 %1949  ;;  %v1914_v35 = vpop.permute.xlu0 %1913 }
 0x2ad   : > { %v1972_v53 = vsel %vm4723_vm9, %v1971_v49, %v1950_v31  ;;  %v2330_v31 = vld [vmem:[%s3998_s15 + $0x60] sm:$0xff] }
 0x2ae   : > { %v2366_v39 = vcombine.low %v2326_v27, %v2330_v31  ;;  %v2367_v41 = vcombine.high %v2326_v27, %v2330_v31 }
 0x2b0   : > { %v1902_v37 = vpop.permute.xlu1 %1901  ;;  %v1918_v38 = vpop.permute.xlu0 %1917 }
 0x2b1   : > { %v1955_v40 = vsel %vm4705_vm3, %v1953_v36, %v1902_v37  ;;  %v2335_v37 = vcombine.high %v2318_v23, %v2322_v25  ;;  %vm2061_vm3 = vcmask 1043576  }
 0x2b2   : > { %v1957_v42 = vsel %vm4704_vm4, %v1955_v40, %v1906_v26  ;;  %v2324_v26 = vld [vmem:[%s3998_s15 + $0x30] sm:$0xff]  ;;  %vm4708_vm4 = vcmask 134144  }
 0x2b3   : > { %v1959_v44 = vsel %vm4703_vm5, %v1957_v42, %v1910_v28  ;;  %v2328_v28 = vld [vmem:[%s3998_s15 + $0x50] sm:$0xff]  ;;  %v4277_v45 = vrot.slane %v2335_v37, %v4071_v51  ;;  %vm4362_vm5 = vmor %vm2006_vm15, %vm2005_vm1  ;;  %vm2089_vm1 = vcmask 1043464  }
 0x2b4   : > { %v1961_v46 = vsel %vm4702_vm6, %v1959_v44, %v1914_v35  ;;  %v4199_v47 = vpop.permute.xlu1 %1984  ;;  %v1922_v48 = vpop.permute.xlu0 %1921  ;;  %v2332_v35 = vld [vmem:[%s3998_s15 + $0x70] sm:$0xff]  ;;  %vm4709_vm6 = vcmask 125952  }
 0x2b5   : > { %v1963_v50 = vsel %vm4701_vm7, %v1961_v46, %v1918_v38  ;;  %v4205_v52 = vsel %vm4715_vm8, %v1983_v33, %v4199_v47  ;;  %v1991_v55 = vmul.f32 %v4199_v47, %v1972_v53  ;;  %v2382_v40 = vcombine.low %v2328_v28, %v2332_v35  ;;  %vm4356_vm7 = vmor %vm2006_vm15, %vm2024_vm0 }
 0x2b6   : > { %v1965_v54 = vsel %vm4723_vm9, %v1963_v50, %v1922_v48  ;;  %v2383_v42 = vcombine.high %v2328_v28, %v2332_v35  ;;  %v2374_v48 = vrot.slane %v2366_v39, %v4071_v51  ;;  %v2381_v50 = vrot.slane %v2367_v41, %v4071_v51  ;;  %vm4376_vm0 = vmor %vm2006_vm15, %vm2061_vm3 }
 0x2b7   : > { %v4210_v56 = vpack.c.bf16 %v1972_v53, %v1965_v54  ;;  %v1990_v57 = vmul.f32 %v4205_v52, %v1965_v54  ;;  %v2390_v49 = vrot.slane %v2382_v40, %v4071_v51  ;;  %vm2120_vm3 = vcmask 1039364  }
 0x2b8   : > { %v4213_v59 = vpop.permute.xlu1 %2040  ;;  %v2067_v60 = vpop.permute.xlu0 %2066  ;;  %vm2187_vm8 = vcmask 908292  }
 0x2b9   : > { %v4217_v61 = vsel %vm4722_vm10, %v2039_v24, %v4213_v59  ;;  %v2047_v62 = vmul.f32 %v4213_v59, %v1972_v53  ;;  %2018 = vrot.lane.b32.xlu1 %v4210_v56, %s3763_s19  ;;  %v3377_v63 = vpack.c.bf16 %v1991_v55, %v1990_v57  ;;  %v2320_v24 = vld [vmem:[%s3998_s15 + $0x10] sm:$0xff]  ;;  %v2321_v55 = vld [vmem:[%s3998_s15 + $0x18] sm:$0xff] }
 0x2ba   : > { %v2046_v0 = vmul.f32 %v4217_v61, %v1965_v54  ;;  %v2350_v36 = vcombine.low %v2320_v24, %v2324_v26  ;;  %v2351_v38 = vcombine.high %v2320_v24, %v2324_v26 }
 0x2bb   : > { %1999 = vrot.lane.b32.xlu0 %v3377_v63, %s3774_s21  ;;  %v2323_v63 = vld [vmem:[%s3998_s15 + $0x28] sm:$0xff] }
 0x2bc   : > { %v4224_v1 = vpop.permute.xlu1 %2068  ;;  %v4226_v2 = vpop.permute.xlu0 %2096  ;;  %v3379_v3 = vpack.c.bf16 %v2047_v62, %v2046_v0  ;;  %v2358_v44 = vrot.slane %v2350_v36, %v4071_v51  ;;  %v4280_v46 = vrot.slane %v2351_v38, %v4071_v51  ;;  %v2325_v0 = vld [vmem:[%s3998_s15 + $0x38] sm:$0xff] }
 0x2bd   : > { %v4230_v4 = vsel %vm4713_vm11, %v2067_v60, %v4224_v1  ;;  %v2075_v5 = vmul.f32 %v4224_v1, %v1972_v53  ;;  %v2104_v11 = vmul.f32 %v4226_v2, %v1965_v54  ;;  %v2487_v38 = vcombine.high %v2321_v55, %v2325_v0 }
 0x2be   : > { %v2074_v6 = vmul.f32 %v4230_v4, %v1965_v54  ;;  %v2399_v57 = vcombine.high %v2342_v43, %v2358_v44  ;;  %v2414_v60 = vcombine.low %v4277_v45, %v4280_v46  ;;  %v2398_v62 = vcombine.low %v2342_v43, %v2358_v44 }
 0x2bf   : > { %2055 = vrot.lane.b32.xlu0 %v3379_v3, %s3772_s11  ;;  %v2327_v3 = vld [vmem:[%s3998_s15 + $0x48] sm:$0xff]  ;;  %v2415_v24 = vcombine.high %v4277_v45, %v4280_v46 }
 0x2c0   : > { %v2099_v7 = vpop.permute.xlu1 %2098  ;;  %v3380_v8 = vpack.c.bf16 %v2075_v5, %v2074_v6  ;;  %v4239_v10 = vpop.permute.xlu0 %2125  ;;  %v2431_v5 = vcombine.high %v2374_v48, %v2390_v49 }
 0x2c1   : > { %v4237_v9 = vsel %vm4714_vm12, %v4226_v2, %v2099_v7  ;;  %v2133_v17 = vmul.f32 %v4239_v10, %v1965_v54  ;;  %v2430_v7 = vcombine.low %v2374_v48, %v2390_v49  ;;  %v2501_v48 = vrot.slane %v2487_v38, %v4071_v51 }
 0x2c2   : > { %v2105_v12 = vmul.f32 %v4237_v9, %v1972_v53  ;;  %2083 = vrot.lane.b32.xlu1 %v3380_v8, %s3771_s20  ;;  %v2329_v8 = vld [vmem:[%s3998_s15 + $0x58] sm:$0xff] }
 0x2c4   : > { %v2128_v13 = vpop.permute.xlu1 %2127  ;;  %v3381_v14 = vpack.c.bf16 %v2105_v12, %v2104_v11  ;;  %v4251_v20 = vpop.permute.xlu0 %2164  ;;  %v2331_v11 = vld [vmem:[%s3998_s15 + $0x68] sm:$0xff]  ;;  %v2333_v12 = vld [vmem:[%s3998_s15 + $0x78] sm:$0xff] }
 0x2c5   : > { %v4246_v15 = vsel %vm4710_vm13, %v4239_v10, %v2128_v13  ;;  %v2172_v16 = vmul.f32 %v4251_v20, %v1965_v54  ;;  %v2319_v54 = vld [vmem:[%s3998_s15 + $0x8] sm:$0xff]  ;;  %v2413_v13 = vrot.slane %v2399_v57, %v4074_v58  ;;  %v2503_v39 = vcombine.high %v2327_v3, %v2331_v11  ;;  %s417_s15 = scalar_lea.vmem [#allocation8], %s3284_s26 }
 0x2c6   : > { %v2134_v19 = vmul.f32 %v4246_v15, %v1972_v53  ;;  %2113 = vrot.lane.b32.xlu0 %v3381_v14, %s4699_s28  ;;  %v2422_v14 = vrot.slane %v2414_v60, %v4074_v58  ;;  %v2471_v37 = vcombine.high %v2319_v54, %v2323_v63  ;;  %v2519_v40 = vcombine.high %v2329_v8, %v2333_v12 }
 0x2c7   : > { %v2517_v49 = vrot.slane %v2503_v39, %v4071_v51 }
 0x2c8   : > { %v2167_v18 = vpop.permute.xlu1 %2166  ;;  %v3382_v30 = vpack.c.bf16 %v2134_v19, %v2133_v17  ;;  %v4299_v17 = vrot.slane %v2398_v62, %v4074_v58  ;;  %v2445_v19 = vrot.slane %v2431_v5, %v4074_v58  ;;  %v2485_v46 = vrot.slane %v2471_v37, %v4071_v51 }
 0x2c9   : > { %v4255_v33 = vsel %vm4707_vm14, %v4251_v20, %v2167_v18 }
 0x2ca   : > { %v2173_v32 = vmul.f32 %v4255_v33, %v1972_v53  ;;  %2153 = vrot.lane.b32.xlu0 %v4210_v56, %s3769_s22  ;;  %2142 = vrot.lane.b32.xlu1 %v3382_v30, %s3766_s18  ;;  %v2397_v53 = vrot.slane %v2383_v42, %v4071_v51  ;;  %v4304_v30 = vrot.slane %v2430_v7, %v4074_v58 }
 0x2cb   : > { %v2464_v23 = vcombine.low %v2413_v13, %v2445_v19  ;;  %v2465_v26 = vcombine.high %v2413_v13, %v2445_v19  ;;  %v2550_v5 = vcombine.low %v2485_v46, %v2501_v48  ;;  %v2551_v19 = vcombine.high %v2485_v46, %v2501_v48 }
 0x2cc   : > { %v3383_v21 = vpack.c.bf16 %v2173_v32, %v2172_v16  ;;  %v2446_v6 = vcombine.low %v2381_v50, %v2397_v53  ;;  %v2470_v16 = vcombine.low %v2319_v54, %v2323_v63  ;;  %v2486_v32 = vcombine.low %v2321_v55, %v2325_v0 }
 0x2cd   : > { %v2447_v25 = vcombine.high %v2381_v50, %v2397_v53  ;;  %v2463_v28 = vcombine.high %v4299_v17, %v4304_v30  ;;  %v2462_v41 = vcombine.low %v4299_v17, %v4304_v30  ;;  %v2533_v50 = vrot.slane %v2519_v40, %v4071_v51 }
 0x2ce   : > { %2181 = vrot.lane.b32.xlu1 %v3383_v21, %s3759_s0  ;;  %2207 = vperm.xlu0 %3595, %v2203_v22   ;;  %v2454_v18 = vrot.slane %v2446_v6, %v4074_v58  ;;  %v2502_v21 = vcombine.low %v2327_v3, %v2331_v11  ;;  %v2518_v22 = vcombine.low %v2329_v8, %v2333_v12 }
 0x2cf   : > { %v2478_v31 = vrot.slane %v2470_v16, %v4071_v51  ;;  %v2494_v35 = vrot.slane %v2486_v32, %v4071_v51  ;;  %v2461_v0 = vrot.slane %v2447_v25, %v4074_v58  ;;  %v2582_v6 = vcombine.low %v2517_v49, %v2533_v50 }
 0x2d0   : > { %v2466_v27 = vcombine.low %v2422_v14, %v2454_v18  ;;  %v2510_v34 = vrot.slane %v2502_v21, %v4071_v51  ;;  %v2526_v36 = vrot.slane %v2518_v22, %v4071_v51  ;;  %v2467_v63 = vcombine.high %v2422_v14, %v2454_v18  ;;  %v2204_v22 = vld [vmem:[%s4688_s6 + $0x8] sm:$0xff] }
 0x2d1   : > { %v2534_v42 = vcombine.low %v2478_v31, %v2494_v35  ;;  %v2535_v44 = vcombine.high %v2478_v31, %v2494_v35  ;;  %v2429_v51 = vrot.slane %v2415_v24, %v4074_v58  ;;  %v2558_v11 = vrot.slane %v2550_v5, %v4074_v58 }
 0x2d2   : > { %2611 = vrot.lane.b32.xlu0 %v2464_v23, %s3762_s29  ;;  %2607 = vrot.lane.b32.xlu1 %v2463_v28, %s3763_s19  ;;  %v2566_v43 = vcombine.low %v2510_v34, %v2526_v36  ;;  %v2567_v45 = vcombine.high %v2510_v34, %v2526_v36  ;;  %v2590_v12 = vrot.slane %v2582_v6, %v4074_v58 }
 0x2d3   : > { %v4324_v53 = vrot.slane %v2534_v42, %v4074_v58  ;;  %v2549_v55 = vrot.slane %v2535_v44, %v4074_v58  ;;  %v2468_v7 = vcombine.low %v2429_v51, %v2461_v0  ;;  %v2469_v13 = vcombine.high %v2429_v51, %v2461_v0 }
 0x2d4   : > { %v4327_v54 = vrot.slane %v2566_v43, %v4074_v58  ;;  %v2581_v57 = vrot.slane %v2567_v45, %v4074_v58  ;;  %v2602_v14 = vcombine.low %v2558_v11, %v2590_v12  ;;  %v2583_v18 = vcombine.high %v2517_v49, %v2533_v50 }
 0x2d5   : > { %v2603_v16 = vcombine.high %v2558_v11, %v2590_v12  ;;  %v2565_v32 = vrot.slane %v2551_v19, %v4074_v58 }
 0x2d6   : > { %2615 = vrot.lane.b32.xlu0 %v2465_v26, %s3764_s27  ;;  %v2599_v60 = vcombine.high %v4324_v53, %v4327_v54  ;;  %v2598_v62 = vcombine.low %v4324_v53, %v4327_v54  ;;  %v2600_v3 = vcombine.low %v2549_v55, %v2581_v57  ;;  %v2601_v8 = vcombine.high %v2549_v55, %v2581_v57 }
 0x2d7   : > { %v2597_v21 = vrot.slane %v2583_v18, %v4074_v58 }
 0x2d8   : > { %2635 = vrot.lane.b32.xlu1 %v2599_v60, %s3763_s19 }
 0x2d9   : > { %v2604_v23 = vcombine.low %v2565_v32, %v2597_v21  ;;  %v2605_v24 = vcombine.high %v2565_v32, %v2597_v21 }
 0x2da   : > { %2619 = vrot.lane.b32.xlu0 %v2466_v27, %s3765_s23 }
 0x2dc   : > { %2639 = vrot.lane.b32.xlu1 %v2600_v3, %s3762_s29  ;;  %s3176_s29 = sshll.u32 %s417_s15, 4  ;;  %s4632_s29 = int_to_ptr.vmem [resolvable:$true] %s3176_s29 }
 0x2dd   : > { %s3681_s28 = scalar_lea.vmem %s4632_s29, 512 }
 0x2de   : > { %2623 = vrot.lane.b32.xlu0 %v2467_v63, %s3767_s24  ;;  %p3682_p13 = scmp.ne.s32.totalorder %s4632_s29, %s3681_s28 }
 0x2e0   : > { %2643 = vrot.lane.b32.xlu1 %v2601_v8, %s3764_s27  ;;  %s3398_s27 = sshll.u32 %s3853_s17, 9  ;;  %s3163_s17 = scalar_lea.sflag [#allocation5], %s3986_s12 }
 0x2e1   : > { %p3683_p12 = pnand %p3682_p13, %p4808_p1 }
 0x2e2   : > { %2627 = vrot.lane.b32.xlu0 %v2468_v7, %s3768_s30 }
 0x2e3   : > { %p3684_p10 = pneg %p3683_p12 }
 0x2e4   : > { %2647 = vrot.lane.b32.xlu1 %v2602_v14, %s3765_s23  ;;  %v4753_v14 = vmov 0 }
 0x2e6   : > { %2631 = vrot.lane.b32.xlu0 %v2469_v13, %s3769_s22 }
 0x2e8   : > { %2651 = vrot.lane.b32.xlu1 %v2603_v16, %s3767_s24  ;;  %s4770_s24 = smov 127  }
 0x2ea   : > { %2212 = vperm.xlu0 %3595, %v2204_v22  }
 0x2ec   : > { %2655 = vrot.lane.b32.xlu1 %v2604_v23, %s3768_s30  ;;  %s4637_s30 = scalar_lea.hbm %s4692_s10, %s3398_s27 }
 0x2f0   : > { %2659 = vrot.lane.b32.xlu1 %v2605_v24, %s3769_s22 }
 0x32b   : > { %v2019_v25 = vpop.permute.xlu1 %2018 }
 0x32c   : > { %v2020_v26 = vrot.slane %v2019_v25, 4 }
 0x32d   : > { %v2000_v27 = vpop.permute.xlu0 %1999 }
 0x32e   : > { %v2022_v28 = vsel %vm4706_vm2, %v2020_v26, %v2019_v25  ;;  %v2001_v35 = vrot.slane %v2000_v27, 4  ;;  %vm4711_vm2 = vcmask 117760  }
 0x32f   : > { %2026 = vst.msk [vmem:[#allocation2 + $0x8] sm:$0xff] %vm4356_vm7, %v2022_v28  ;;  %v3607_v28 = vld [vmem:[%s4687_s5] sm:$0xff]  }
 0x330   : > { %2028 = vst.msk [vmem:[#allocation2 + $0x8] sm:$0xf] %vm4709_vm6, %v3773_v29  ;;  %v2003_v34 = vsel %vm4707_vm14, %v2001_v35, %v2000_v27  ;;  %vm4384_vm14 = vmor %vm2006_vm15, %vm2089_vm1  ;;  %vm4712_vm6 = vcmask 3072   ;;  %vm2148_vm15 = vcmask 924676   ;;  %vm4716_vm1 = vcmask 1044472  }
 0x331   : > { %2008 = vst.msk [vmem:[#allocation2] sm:$0xff] %vm4362_vm5, %v2003_v34  ;;  %v2056_v36 = vpop.permute.xlu0 %2055 }
 0x332   : > { %2010 = vst.msk [vmem:[#allocation2] sm:$0xf] %vm4708_vm4, %v3773_v29  ;;  %v2057_v38 = vrot.slane %v2056_v36, 4  ;;  %vm4717_vm4 = vcmask 1043456  }
 0x334   : > { %v2059_v39 = vsel %vm4710_vm13, %v2057_v38, %v2056_v36  ;;  %v2084_v40 = vpop.permute.xlu1 %2083  ;;  %vm4394_vm13 = vmor %vm2120_vm3, %vm4717_vm4 }
 0x335   : > { %2063 = vst.msk [vmem:[#allocation2 + $0x10] sm:$0xff] %vm4376_vm0, %v2059_v39  ;;  %v2085_v43 = vrot.slane %v2084_v40, 4  ;;  %vm4404_vm3 = vmor %vm2148_vm15, %vm4717_vm4  ;;  %vm4719_vm15 = vcmask 1044344  }
 0x336   : > { %2065 = vst.msk [vmem:[#allocation2 + $0x10] sm:$0xf] %vm4711_vm2, %v3773_v29  ;;  %vm2159_vm2 = vcmask 916484  }
 0x337   : > { %v2087_v44 = vsel %vm4714_vm12, %v2085_v43, %v2084_v40  ;;  %v2195_v50 = vld [vmem:[#allocation2 + $0x8] sm:$0xff]  ;;  %vm4720_vm12 = vcmask 1044352  }
 0x338   : > { %2091 = vst.msk [vmem:[#allocation2 + $0x18] sm:$0xff] %vm4384_vm14, %v2087_v44  ;;  %v2114_v46 = vpop.permute.xlu0 %2113  ;;  %v3597_v55 = vld [vmem:[#allocation2 + $0x4] ss:$8 sps:$4 sm:$0xff]  }
 0x339   : > { %2093 = vst.msk [vmem:[#allocation2 + $0x18] sm:$0xf] %vm4712_vm6, %v3773_v29  ;;  %v2115_v48 = vrot.slane %v2114_v46, 4  ;;  %v2194_v49 = vld [vmem:[#allocation2] sm:$0xff]  ;;  %2275 = vmatprep.subr.bf16.mxu0 %v3597_v55  ;;  %vm4411_vm6 = vmor %vm2159_vm2, %vm4717_vm4 }
 0x33a   : > { %v3318_v57 = vcombine.low %v2194_v49, %v2195_v50  ;;  %vm4426_vm2 = vmor %vm2187_vm8, %vm4717_vm4  ;;  %vm4718_vm8 = vcmask 588800  }
 0x33b   : > { %v2117_v60 = vsel %vm4713_vm11, %v2114_v46, %v2115_v48  ;;  %vm4721_vm11 = vcmask 1044360   ;;  %v4754_v14 = vsel %vm4426_vm2, 4294967295, %v4753_v14 }
 0x33c   : > { %2122 = vst.msk [vmem:[#allocation2 + $0x28] sm:$0xff] %vm4394_vm13, %v2117_v60  ;;  %v2143_v51 = vpop.permute.xlu1 %2142  ;;  %v2154_v0 = vpop.permute.xlu0 %2153  ;;  %2276 = vmatpush1.bf16.msra.mxu0 %v3318_v57 }
 0x33d   : > { %2124 = vst.msk [vmem:[#allocation2 + $0x2c] sm:$0xf] %vm4716_vm1, %v3773_v29  ;;  %v2144_v3 = vrot.slane %v2143_v51, 4  ;;  %v2155_v6 = vrot.slane %v2154_v0, 4  ;;  %vm4755_vm1 = vcmask 908288  }
 0x33f   : > { %v2146_v7 = vsel %vm4722_vm10, %v2143_v51, %v2144_v3  ;;  %v2157_v8 = vsel %vm4723_vm9, %v2154_v0, %v2155_v6  ;;  %v3599_v12 = vld [vmem:[#allocation2 + $0x14] ss:$8 sps:$4 sm:$0xff]   ;;  %vm4762_vm10 = vcmask 523264  }
 0x340   : > { %2150 = vst.msk [vmem:[#allocation2 + $0x30] sm:$0xff] %vm4404_vm3, %v2146_v7  ;;  %v2182_v11 = vpop.permute.xlu1 %2181  ;;  %v3601_v13 = vld [vmem:[#allocation2 + $0x10] ss:$8 sps:$4 sm:$0xff]   ;;  %2277 = vmatprep.subr.bf16.mxu0 %v3599_v12  ;;  %vm4763_vm9 = vmmov %vm4762_vm10 }
 0x341   : > { %2161 = vst.msk [vmem:[#allocation2 + $0x38] sm:$0xff] %vm4411_vm6, %v2157_v8  ;;  %v2183_v19 = vrot.slane %v2182_v11, 4  ;;  %2278 = vmatpush1.bf16.msra.mxu0 %v3601_v13 }
 0x342   : > { %2152 = vst.msk [vmem:[#allocation2 + $0x34] sm:$0xf] %vm4721_vm11, %v3773_v29 }
 0x343   : > { %2163 = vst.msk [vmem:[#allocation2 + $0x3c] sm:$0xf] %vm4720_vm12, %v3773_v29  ;;  %v2185_v18 = vsel %vm4755_vm1, %v2182_v11, %v2183_v19  ;;  %vm4756_vm1 = vcmask 130048   ;;  %vm4760_vm12 = vcmask 392192  }
 0x344   : > { %2189 = vst.msk [vmem:[#allocation2 + $0x40] sm:$0xff] %vm4426_vm2, %v2185_v18  ;;  %v2199_v16 = vld [vmem:[#allocation2 + $0x28] sm:$0xff]  ;;  %vm4761_vm11 = vmmov %vm4760_vm12 }
 0x345   : > { %2191 = vst.msk [vmem:[#allocation2 + $0x44] sm:$0xf] %vm4719_vm15, %v3773_v29  ;;  %v3323_v32 = vcombine.high %v4210_v56, %v2199_v16  ;;  %v3322_v21 = vcombine.low %v4210_v56, %v2199_v16  ;;  %v2608_v56 = vpop.permute.xlu1 %2607 }
 0x346   : > { %v2662_v46 = vsel %vm4756_vm1, %v2462_v41, %v2608_v56 }
 0x347   : > { %2279 = vmatprep.subr.bf16.mxu0 %v3323_v32 }
 0x348   : > { %2280 = vmatpush1.bf16.msra.mxu0 %v3322_v21  ;;  %v3604_v23 = vld [vmem:[#allocation2 + $0x30] ss:$8 sps:$4 sm:$0xff]  }
 0x34a   : > { %v3602_v22 = vld [vmem:[#allocation2 + $0x34] ss:$8 sps:$4 sm:$0xff]   ;;  %v2636_v34 = vpop.permute.xlu1 %2635 }
 0x34b   : > { %2281 = vmatprep.subr.bf16.mxu0 %v3602_v22 }
 0x34c   : > { %2282 = vmatpush1.bf16.msra.mxu0 %v3604_v23  ;;  %v2202_v24 = vld [vmem:[#allocation2 + $0x40] sm:$0xff] }
 0x34d   : > { %v3327_v25 = vcombine.high %v2202_v24, %v2202_v24  ;;  %v3326_v26 = vcombine.low %v2202_v24, %v2202_v24  ;;  %v2208_v35 = vpop.permute.xlu0 %2207 }
 0x34e   : > { %v2640_v38 = vpop.permute.xlu1 %2639 }
 0x34f   : > { %3328 = vmatprep.subr.msk.bf16.mxu0 %vm4717_vm4, %v3327_v25  ;;  %v2270_v27 = vsel %vm4717_vm4, %v3326_v26, 0  ;;  %vm4757_vm4 = vmmov %vm4756_vm1  ;;  %vm4764_vm1 = vcmask 654336  }
 0x350   : > { %2284 = vmatpush1.bf16.msra.mxu0 %v2270_v27  ;;  %v2669_v49 = vsel %vm4757_vm4, %v2598_v62, %v2636_v34  ;;  %vm4765_vm2 = vmmov %vm4764_vm1  ;;  %vm4766_vm4 = vcmask 785408  }
 0x351   : > { %v2612_v36 = vpop.permute.xlu0 %2611 }
 0x352   : > { %v2644_v40 = vpop.permute.xlu1 %2643 }
 0x353   : > { %3329 = vmatmul.mubr.msk.bf16.vlgmr.msra.gmra.mrb[20].mxu0 %vm4718_vm8, %v3607_v28  ;;  %vm4758_vm8 = vcmask 261120  }
 0x354   : > { %v2663_v50 = vsel %vm4758_vm8, %v2662_v46, %v2612_v36  ;;  %vm4759_vm15 = vmmov %vm4758_vm8 }
 0x355   : > { %v2616_v39 = vpop.permute.xlu0 %2615  ;;  %v2670_v55 = vsel %vm4759_vm15, %v2669_v49, %v2640_v38  ;;  %vm4767_vm8 = vmmov %vm4766_vm4  ;;  %vm4774_vm15 = vcmask 7168  }
 0x356   : > { %v2648_v44 = vpop.permute.xlu1 %2647  ;;  %v2664_v60 = vsel %vm4760_vm12, %v2663_v50, %v2616_v39  ;;  %v2671_v0 = vsel %vm4761_vm11, %v2670_v55, %v2644_v40  ;;  %vm4768_vm12 = vcmask 916480   ;;  %vm4772_vm11 = vcmask 125952  }
 0x357   : > { %v2672_v30 = vsel %vm4763_vm9, %v2671_v0, %v2648_v44  ;;  %vm4769_vm9 = vmmov %vm4768_vm12 }
 0x359   : > { %v2620_v43 = vpop.permute.xlu0 %2619 }
 0x35a   : > { %v2652_v57 = vpop.permute.xlu1 %2651  ;;  %v2665_v17 = vsel %vm4762_vm10, %v2664_v60, %v2620_v43  ;;  %vm4771_vm10 = vcmask 130048  }
 0x35b   : > { %v2673_v54 = vsel %vm4765_vm2, %v2672_v30, %v2652_v57  ;;  %vm4773_vm2 = vcmask 138240  }
 0x35d   : > { %v2624_v48 = vpop.permute.xlu0 %2623 }
 0x35e   : > { %v2656_v41 = vpop.permute.xlu1 %2655  ;;  %v2666_v3 = vsel %vm4764_vm1, %v2665_v17, %v2624_v48  ;;  %vm4775_vm1 = vcmask 134144  }
 0x35f   : > { %v2674_v6 = vsel %vm4767_vm8, %v2673_v54, %v2656_v41  ;;  %vm4777_vm8 = vcmask 121856  }
 0x361   : > { %v2628_v51 = vpop.permute.xlu0 %2627 }
 0x362   : > { %v2667_v62 = vsel %vm4766_vm4, %v2666_v3, %v2628_v51  ;;  %v2660_v7 = vpop.permute.xlu1 %2659  ;;  %vm4776_vm4 = vcmask 3072  }
 0x363   : > { %v2675_v32 = vsel %vm4769_vm9, %v2674_v6, %v2660_v7  ;;  %vm4779_vm9 = vcmask 117760  }
 0x365   : > { %v2632_v53 = vpop.permute.xlu0 %2631 }
 0x366   : > { %v2668_v13 = vsel %vm4768_vm12, %v2667_v62, %v2632_v53  ;;  %vm4778_vm12 = vmmov %vm4771_vm10 }
 0x369   : > { %v2213_v19 = vpop.permute.xlu0 %2212 }
 0x426   : > { %v2309_v8 = vpop.f32.mrb[20].mxu0 }
 0x427   : > { %v2310_v11 = vadd.f32 %v2309_v8, %v2208_v35  ;;  %v2311_v12 = vpop.f32.mrb[21].mxu0 }
 0x428   : > { %v2312_v18 = vadd.f32 %v2311_v12, %v2208_v35  ;;  %v2313_v16 = vpop.f32.mrb[22].mxu0 }
 0x429   : > { %v2676_v21 = vmul.f32 %v2668_v13, %v2310_v11  ;;  %v2314_v22 = vadd.f32 %v2313_v16, %v2213_v19  ;;  %v2315_v23 = vpop.f32.mrb[23].mxu0 }
 0x42a   : > { %v2677_v24 = vmul.f32 %v2675_v32, %v2312_v18  ;;  %v2316_v25 = vadd.f32 %v2315_v23, %v2213_v19 }
 0x42b   : > { %v2724_v26 = vmul.f32 %v2676_v21, %v4230_v4  ;;  %v2678_v27 = vmul.f32 %v2676_v21, %v4205_v52  ;;  %v2708_v28 = vmul.f32 %v2676_v21, %v4217_v61  ;;  %v2808_v56 = vmul.f32 %v2314_v22, %v4205_v52 }
 0x42c   : > { %v4467_v34 = vpack.c.bf16 %v2677_v24, %v2676_v21  ;;  %v4469_v36 = vpack.c.bf16 %v2316_v25, %v2314_v22  ;;  %v2725_v35 = vmul.f32 %v2677_v24, %v4224_v1  ;;  %v2679_v38 = vmul.f32 %v2677_v24, %v4199_v47 }
 0x42d   : > { %v2709_v39 = vmul.f32 %v2677_v24, %v4213_v59  ;;  %v2809_v40 = vmul.f32 %v2316_v25, %v4199_v47  ;;  %v2742_v43 = vmul.f32 %v2676_v21, %v4226_v2  ;;  %v2743_v44 = vmul.f32 %v2677_v24, %v4237_v9 }
 0x42e   : > { %2701 = vrot.lane.b32.xlu0 %v4467_v34, %s3763_s19  ;;  %2831 = vrot.lane.b32.xlu1 %v4469_v36, %s3763_s19  ;;  %v3387_v52 = vpack.c.bf16 %v2725_v35, %v2724_v26  ;;  %v3384_v46 = vpack.c.bf16 %v2679_v38, %v2678_v27  ;;  %v2758_v48 = vmul.f32 %v2676_v21, %v4239_v10 }
 0x42f   : > { %v3386_v49 = vpack.c.bf16 %v2709_v39, %v2708_v28  ;;  %v3391_v50 = vpack.c.bf16 %v2809_v40, %v2808_v56  ;;  %v3388_v55 = vpack.c.bf16 %v2743_v44, %v2742_v43  ;;  %v2759_v57 = vmul.f32 %v2677_v24, %v4246_v15 }
 0x430   : > { %v2838_v47 = vmul.f32 %v2314_v22, %v4217_v61  ;;  %v2839_v60 = vmul.f32 %v2316_v25, %v4213_v59  ;;  %v2854_v51 = vmul.f32 %v2314_v22, %v4230_v4  ;;  %v2855_v0 = vmul.f32 %v2316_v25, %v4224_v1 }
 0x431   : > { %v3389_v17 = vpack.c.bf16 %v2759_v57, %v2758_v48  ;;  %v2781_v30 = vmul.f32 %v2676_v21, %v4251_v20  ;;  %v2782_v41 = vmul.f32 %v2677_v24, %v4255_v33  ;;  %v2872_v3 = vmul.f32 %v2314_v22, %v4226_v2 }
 0x432   : > { %2733 = vrot.lane.b32.xlu0 %v3387_v52, %s3771_s20  ;;  %2687 = vrot.lane.b32.xlu1 %v3384_v46, %s3774_s21  ;;  %v3393_v53 = vpack.c.bf16 %v2839_v60, %v2838_v47  ;;  %v3394_v54 = vpack.c.bf16 %v2855_v0, %v2854_v51  ;;  %v2873_v61 = vmul.f32 %v2316_v25, %v4237_v9  ;;  %v3143_v9 = vld [vmem:[%s4691_s9 + $0x8] sm:$0xff] }
 0x433   : > { %v3390_v59 = vpack.c.bf16 %v2782_v41, %v2781_v30  ;;  %v2888_v4 = vmul.f32 %v2314_v22, %v4239_v10  ;;  %v2889_v1 = vmul.f32 %v2316_v25, %v4246_v15  ;;  %v2911_v62 = vmul.f32 %v2314_v22, %v4251_v20  ;;  %v3142_v10 = vld [vmem:[%s4691_s9] sm:$0xff] }
 0x434   : > { %v3395_v6 = vpack.c.bf16 %v2873_v61, %v2872_v3  ;;  %v2912_v7 = vmul.f32 %v2316_v25, %v4255_v33 }
 0x435   : > { %v3396_v8 = vpack.c.bf16 %v2889_v1, %v2888_v4 }
 0x436   : > { %2717 = vrot.lane.b32.xlu1 %v3386_v49, %s3772_s11  ;;  %2817 = vrot.lane.b32.xlu0 %v3391_v50, %s3774_s21  ;;  %v3397_v2 = vpack.c.bf16 %v2912_v7, %v2911_v62  ;;  %s3775_s21 = smov [#allocation8]  }
 0x43a   : > { %2751 = vrot.lane.b32.xlu1 %v3388_v55, %s4770_s24  ;;  %2767 = vrot.lane.b32.xlu0 %v3389_v17, %s3766_s18 }
 0x43e   : > { %2774 = vrot.lane.b32.xlu1 %v4467_v34, %s3769_s22  ;;  %2847 = vrot.lane.b32.xlu0 %v3393_v53, %s3772_s11  ;;  %s3685_s11 = sshll.u32 %s3775_s21, 4  ;;  %s3686_s11 = int_to_ptr.vmem [resolvable:$false] %s3685_s11 }
 0x43f   : > { %p3688_p5 = scmp.lt.s32.totalorder %s4632_s29, %s3686_s11 }
 0x442   : > { %2863 = vrot.lane.b32.xlu1 %v3394_v54, %s3771_s20  ;;  %2790 = vrot.lane.b32.xlu0 %v3390_v59, %s3759_s0 }
 0x446   : > { %2881 = vrot.lane.b32.xlu1 %v3395_v6, %s4770_s24  ;;  %2897 = vrot.lane.b32.xlu0 %v3396_v8, %s3766_s18 }
 0x44a   : > { %2904 = vrot.lane.b32.xlu1 %v4469_v36, %s3769_s22  ;;  %2920 = vrot.lane.b32.xlu0 %v3397_v2, %s3759_s0  ;;  %s3687_s0 = scalar_lea.vmem %s3686_s11, 1024 }
 0x44b   : > { %p3689_p7 = scmp.lt.s32.totalorder %s3687_s0, %s3681_s28 }
 0x44d   : > { %p3690_p9 = por %p3689_p7, %p3688_p5 }
 0x44e   : > { %3151 = vperm.xlu0 %3595, %v3143_v9   ;;  %3146 = vperm.xlu1 %3596, %v3142_v10  }
 0x44f   : > { %p3691_p11 = pnand %p3690_p9, %p3684_p10 }
 0x4a0   : > { %v2832_v15 = vpop.permute.xlu1 %2831  ;;  %v2702_v20 = vpop.permute.xlu0 %2701 }
 0x4a1   : > { %v2703_v33 = vrot.slane %v2702_v20, 4  ;;  %v2833_v21 = vrot.slane %v2832_v15, 4 }
 0x4a3   : > { %v2704_v11 = vsel %vm4771_vm10, %v2703_v33, %v2702_v20  ;;  %v2834_v26 = vsel %vm4778_vm12, %v2833_v21, %v2832_v15  ;;  %vm4780_vm10 = vmmov %vm4772_vm11  ;;  %vm4788_vm12 = vcmask 121856  }
 0x4a4   : > { %2706 = vst.msk [vmem:[#allocation2 + $0x8] sm:$0xff] %vm4356_vm7, %v2704_v11  ;;  %v2688_v12 = vpop.permute.xlu1 %2687  ;;  %v2734_v13 = vpop.permute.xlu0 %2733 }
 0x4a5   : > { %2707 = vst.msk [vmem:[#allocation2 + $0x8] sm:$0xf] %vm4772_vm11, %v3773_v29  ;;  %v2689_v19 = vrot.slane %v2688_v12, 4  ;;  %v2735_v18 = vrot.slane %v2734_v13, 4  ;;  %vm4781_vm11 = vcmask 1039360  }
 0x4a7   : > { %v2690_v16 = vsel %vm4773_vm2, %v2689_v19, %v2688_v12  ;;  %v2736_v32 = vsel %vm4774_vm15, %v2735_v18, %v2734_v13  ;;  %vm4782_vm2 = vcmask 924672   ;;  %vm4783_vm15 = vcmask 138240  }
 0x4a8   : > { %2692 = vst.msk [vmem:[#allocation2] sm:$0xff] %vm4362_vm5, %v2690_v16  ;;  %v2718_v22 = vpop.permute.xlu1 %2717  ;;  %v2818_v23 = vpop.permute.xlu0 %2817 }
 0x4a9   : > { %2738 = vst.msk [vmem:[#allocation2 + $0x18] sm:$0xff] %vm4384_vm14, %v2736_v32  ;;  %v2719_v24 = vrot.slane %v2718_v22, 4  ;;  %v2819_v28 = vrot.slane %v2818_v23, 4 }
 0x4aa   : > { %2693 = vst.msk [vmem:[#allocation2] sm:$0xf] %vm4775_vm1, %v3773_v29  ;;  %vm4785_vm1 = vcmask 1044360  }
 0x4ab   : > { %2739 = vst.msk [vmem:[#allocation2 + $0x18] sm:$0xf] %vm4776_vm4, %v3773_v29  ;;  %v2720_v25 = vsel %vm4777_vm8, %v2719_v24, %v2718_v22  ;;  %v2820_v52 = vsel %vm4783_vm15, %v2819_v28, %v2818_v23  ;;  %vm4786_vm4 = vcmask 134144   ;;  %vm4787_vm8 = vcmask 916480  }
 0x4ac   : > { %v4534_v27 = vld [vmem:[#allocation2 + $0x8] sm:$0xff]  ;;  %2722 = vst.msk [vmem:[#allocation2 + $0x10] sm:$0xff] %vm4376_vm0, %v2720_v25  ;;  %v2752_v56 = vpop.permute.xlu1 %2751  ;;  %v2768_v35 = vpop.permute.xlu0 %2767  ;;  %vm4794_vm15 = vcmask 1044344  }
 0x4ad   : > { %2836 = vst.msk [vmem:[#allocation2 + $0x8] sm:$0xff] %vm4356_vm7, %v2834_v26  ;;  %v2753_v38 = vrot.slane %v2752_v56, 4  ;;  %v2769_v39 = vrot.slane %v2768_v35, 4  ;;  %vm4784_vm7 = vcmask 1044472  }
 0x4ae   : > { %2723 = vst.msk [vmem:[#allocation2 + $0x10] sm:$0xf] %vm4779_vm9, %v3773_v29 }
 0x4af   : > { %2837 = vst.msk [vmem:[#allocation2 + $0x8] sm:$0xf] %vm4780_vm10, %v3773_v29  ;;  %v2754_v40 = vsel %vm4781_vm11, %v2752_v56, %v2753_v38  ;;  %v2770_v43 = vsel %vm4782_vm2, %v2768_v35, %v2769_v39  ;;  %vm4790_vm10 = vcmask 7168   ;;  %vm4791_vm11 = vcmask 908288   ;;  %v3620_v56 = vld [vmem:[%s4689_s7] sm:$0xff]  }
 0x4b0   : > { %2756 = vst.msk [vmem:[#allocation2 + $0x28] sm:$0xff] %vm4394_vm13, %v2754_v40  ;;  %v2775_v58 = vpop.permute.xlu1 %2774  ;;  %v2848_v46 = vpop.permute.xlu0 %2847  ;;  %vm4792_vm2 = vnez %v4754_v14 }
 0x4b1   : > { %v4546_v44 = vld [vmem:[#allocation2] sm:$0xff]  ;;  %2772 = vst.msk [vmem:[#allocation2 + $0x30] sm:$0xff] %vm4404_vm3, %v2770_v43  ;;  %v2776_v48 = vrot.slane %v2775_v58, 4  ;;  %v2849_v49 = vrot.slane %v2848_v46, 4 }
 0x4b2   : > { %2822 = vst.msk [vmem:[#allocation2] sm:$0xff] %vm4362_vm5, %v2820_v52  ;;  %vm4789_vm5 = vcmask 1044352   ;;  %v4573_v0 = vld [vmem:[#allocation2 + $0x18] sm:$0xff]  ;;  %v3359_v16 = vcombine.high %v4546_v44, %v4534_v27  ;;  %v3358_v32 = vcombine.low %v4546_v44, %v4534_v27 }
 0x4b3   : > { %2757 = vst.msk [vmem:[#allocation2 + $0x2c] sm:$0xf] %vm4784_vm7, %v3773_v29  ;;  %v2777_v50 = vsel %vm4787_vm8, %v2775_v58, %v2776_v48  ;;  %v2850_v55 = vsel %vm4788_vm12, %v2849_v49, %v2848_v46  ;;  %vm4795_vm7 = vcmask 1039360   ;;  %vm4799_vm12 = vmmov %vm4791_vm11 }
 0x4b4   : > { %2773 = vst.msk [vmem:[#allocation2 + $0x34] sm:$0xf] %vm4785_vm1, %v3773_v29  ;;  %v2864_v57 = vpop.permute.xlu1 %2863  ;;  %v2791_v47 = vpop.permute.xlu0 %2790  ;;  %vm4797_vm1 = vcmask 1044472  }
 0x4b5   : > { %2823 = vst.msk [vmem:[#allocation2] sm:$0xf] %vm4786_vm4, %v3773_v29  ;;  %v4565_v31 = vld [vmem:[#allocation2 + $0x10] sm:$0xff]  ;;  %v2865_v60 = vrot.slane %v2864_v57, 4  ;;  %v2792_v51 = vrot.slane %v2791_v47, 4  ;;  %vm4798_vm4 = vcmask 1044360  }
 0x4b6   : > { %2779 = vst.msk [vmem:[#allocation2 + $0x38] sm:$0xff] %vm4411_vm6, %v2777_v50  ;;  %v3361_v21 = vcombine.high %v4565_v31, %v4573_v0  ;;  %v3360_v22 = vcombine.low %v4565_v31, %v4573_v0 }
 0x4b7   : > { %2780 = vst.msk [vmem:[#allocation2 + $0x3c] sm:$0xf] %vm4789_vm5, %v3773_v29  ;;  %v2866_v17 = vsel %vm4790_vm10, %v2865_v60, %v2864_v57  ;;  %v2793_v30 = vsel %vm4791_vm11, %v2791_v47, %v2792_v51 }
 0x4b8   : > { %2852 = vst.msk [vmem:[#allocation2 + $0x10] sm:$0xff] %vm4376_vm0, %v2850_v55  ;;  %v2882_v41 = vpop.permute.xlu1 %2881  ;;  %v2898_v37 = vpop.permute.xlu0 %2897  ;;  %vm4793_vm0 = vcmask 3072  }
 0x4b9   : > { %2853 = vst.msk [vmem:[#allocation2 + $0x10] sm:$0xf] %vm4779_vm9, %v3773_v29  ;;  %v2883_v3 = vrot.slane %v2882_v41, 4  ;;  %v2899_v53 = vrot.slane %v2898_v37, 4  ;;  %v3610_v61 = vld [vmem:[#allocation2 + $0x4] ss:$8 sps:$4 sm:$0xff]  }
 0x4ba   : > { %2868 = vst.msk [vmem:[#allocation2 + $0x18] sm:$0xff] %vm4384_vm14, %v2866_v17  ;;  %v2804_v59 = vld [vmem:[#allocation2 + $0x28] sm:$0xff]  ;;  %vm4796_vm14 = vcmask 924672   ;;  %2997 = vmatprep.subr.bf16.mxu1 %v3610_v61  ;;  %vm4804_vm9 = vcmask 588800  }
 0x4bb   : > { %2795 = vst.msk [vmem:[#allocation2 + $0x40] sm:$0xff] %vm4792_vm2, %v2793_v30  ;;  %v2884_v4 = vsel %vm4795_vm7, %v2882_v41, %v2883_v3  ;;  %v2805_v42 = vld [vmem:[#allocation2 + $0x30] sm:$0xff]  ;;  %v2900_v1 = vsel %vm4796_vm14, %v2898_v37, %v2899_v53  ;;  %v3363_v23 = vcombine.high %v4467_v34, %v2804_v59  ;;  %v3362_v24 = vcombine.low %v4467_v34, %v2804_v59 }
 0x4bc   : > { %2869 = vst.msk [vmem:[#allocation2 + $0x18] sm:$0xf] %vm4793_vm0, %v3773_v29  ;;  %v3608_v54 = vld [vmem:[#allocation2] ss:$8 sps:$4 sm:$0xff]   ;;  %v2905_v62 = vpop.permute.xlu1 %2904  ;;  %v2921_v6 = vpop.permute.xlu0 %2920 }
 0x4bd   : > { %2796 = vst.msk [vmem:[#allocation2 + $0x44] sm:$0xf] %vm4794_vm15, %v3773_v29  ;;  %v2906_v7 = vrot.slane %v2905_v62, 4  ;;  %v2922_v8 = vrot.slane %v2921_v6, 4  ;;  %2998 = vmatpush1.bf16.msra.mxu1 %v3608_v54 }
 0x4be   : > { %2886 = vst.msk [vmem:[#allocation2 + $0x28] sm:$0xff] %vm4394_vm13, %v2884_v4  ;;  %v2806_v2 = vld [vmem:[#allocation2 + $0x38] sm:$0xff]  ;;  %vm4800_vm13 = vmmov %vm4789_vm5 }
 0x4bf   : > { %2902 = vst.msk [vmem:[#allocation2 + $0x30] sm:$0xff] %vm4404_vm3, %v2900_v1  ;;  %v2907_v9 = vsel %vm4787_vm8, %v2905_v62, %v2906_v7  ;;  %v2923_v45 = vsel %vm4799_vm12, %v2921_v6, %v2922_v8  ;;  %vm4801_vm3 = vmmov %vm4794_vm15  ;;  %v3365_v25 = vcombine.high %v2805_v42, %v2806_v2  ;;  %v3364_v26 = vcombine.low %v2805_v42, %v2806_v2 }
 0x4c0   : > { %2887 = vst.msk [vmem:[#allocation2 + $0x2c] sm:$0xf] %vm4797_vm1, %v3773_v29 }
 0x4c1   : > { %2903 = vst.msk [vmem:[#allocation2 + $0x34] sm:$0xf] %vm4798_vm4, %v3773_v29  ;;  %v3613_v15 = vld [vmem:[#allocation2 + $0x14] ss:$8 sps:$4 sm:$0xff]  }
 0x4c2   : > { %2909 = vst.msk [vmem:[#allocation2 + $0x38] sm:$0xff] %vm4411_vm6, %v2907_v9  ;;  %2999 = vmatprep.subr.bf16.mxu1 %v3613_v15  ;;  %vm4802_vm6 = vcmask 1043456  }
 0x4c3   : > { %v3611_v10 = vld [vmem:[#allocation2 + $0x10] ss:$8 sps:$4 sm:$0xff]   ;;  %2910 = vst.msk [vmem:[#allocation2 + $0x3c] sm:$0xf] %vm4800_vm13, %v3773_v29  ;;  %vm4803_vm5 = vmmov %vm4802_vm6 }
 0x4c4   : > { %v2807_v63 = vld [vmem:[#allocation2 + $0x40] sm:$0xff]  ;;  %3000 = vmatpush1.bf16.msra.mxu1 %v3611_v10  ;;  %vm4805_vm10 = vmmov %vm4803_vm5 }
 0x4c5   : > { %2925 = vst.msk [vmem:[#allocation2 + $0x40] sm:$0xff] %vm4792_vm2, %v2923_v45  ;;  %v3367_v27 = vcombine.high %v2807_v63, %v2807_v63  ;;  %v3366_v28 = vcombine.low %v2807_v63, %v2807_v63  ;;  %vm4806_vm11 = vmmov %vm4803_vm5 }
 0x4c6   : > { %2926 = vst.msk [vmem:[#allocation2 + $0x44] sm:$0xf] %vm4801_vm3, %v3773_v29  ;;  %vm4807_vm2 = vmmov %vm4804_vm9 }
 0x4c7   : > { %v2934_v20 = vld [vmem:[#allocation2 + $0x28] sm:$0xff] }
 0x4c8   : > { %v3349_v33 = vcombine.low %v4469_v36, %v2934_v20  ;;  %v3350_v5 = vcombine.high %v4469_v36, %v2934_v20  ;;  %v3619_v36 = vld [vmem:[%s4690_s8] sm:$0xff]  }
 0x4c9   : > { %v3614_v13 = vld [vmem:[#allocation2 + $0x30] ss:$8 sps:$4 sm:$0xff]  }
 0x4ca   : > { %3001 = vmatprep.subr.bf16.mxu1 %v3350_v5  ;;  %v3616_v11 = vld [vmem:[#allocation2 + $0x34] ss:$8 sps:$4 sm:$0xff]  }
 0x4cb   : > { %3002 = vmatpush1.bf16.msra.mxu1 %v3349_v33 }
 0x4cc   : > { %3003 = vmatprep.subr.bf16.mxu1 %v3616_v11 }
 0x4cd   : > { %v2937_v12 = vld [vmem:[#allocation2 + $0x40] sm:$0xff]  ;;  %v3147_v34 = vpop.permute.xlu1 %3146  ;;  %v3152_v40 = vpop.permute.xlu0 %3151 }
 0x4ce   : > { %v3354_v19 = vcombine.high %v2937_v12, %v2937_v12  ;;  %v3353_v14 = vcombine.low %v2937_v12, %v2937_v12 }
 0x4cf   : > { %3004 = vmatpush1.bf16.msra.mxu1 %v3614_v13 }
 0x4d0   : > { %3355 = vmatprep.subr.msk.bf16.mxu1 %vm4802_vm6, %v3354_v19  ;;  %v2992_v18 = vsel %vm4803_vm5, %v3353_v14, 0 }
 0x4d3   : > { %3006 = vmatpush1.bf16.msra.mxu1 %v2992_v18 }
 0x4d4   : > { %3099 = vmatprep.subr.bf16.mxu1 %v3359_v16 }
 0x4d6   : > { %3356 = vmatmul.mubr.msk.bf16.vlgmr.msra.gmra.mrb[12].mxu1 %vm4804_vm9, %v3619_v36 }
 0x4d7   : > { %3100 = vmatpush1.bf16.msra.mxu1 %v3358_v32  ;;  %3131 = vmatprep.mubr.bf16.mxu1 %v3773_v29  ;;  %v3094_v29 = vsel %vm4806_vm11, %v3366_v28, 0 }
 0x4d8   : > { %3101 = vmatprep.subr.bf16.mxu1 %v3361_v21 }
 0x4db   : > { %3102 = vmatpush1.bf16.msra.mxu1 %v3360_v22 }
 0x4dc   : > { %3103 = vmatprep.subr.bf16.mxu1 %v3363_v23 }
 0x4df   : > { %3104 = vmatpush1.bf16.msra.mxu1 %v3362_v24 }
 0x4e0   : > { %3105 = vmatprep.subr.bf16.mxu1 %v3365_v25 }
 0x4e3   : > { %3106 = vmatpush1.bf16.msra.mxu1 %v3364_v26 }
 0x4e4   : > { %3368 = vmatprep.subr.msk.bf16.mxu1 %vm4805_vm10, %v3367_v27 }
 0x4e7   : > { %3108 = vmatpush1.bf16.msra.mxu1 %v3094_v29 }
 0x4ea   : > { %3369 = vmatmul.mubr.msk.bf16.vlgmr.msra.gmra.mrb[12].mxu1 %vm4807_vm2, %v3620_v56 }
 0x5bd   : > { %v3133_v35 = vpop.f32.mrb[12].mxu1 }
 0x5be   : > { %v3154_v38 = vadd.f32 %v3147_v34, %v3133_v35  ;;  %v3135_v39 = vpop.f32.mrb[13].mxu1 }
 0x5bf   : > { %v3155_v43 = vadd.f32 %v3147_v34, %v3135_v39  ;;  %v3137_v44 = vpop.f32.mrb[14].mxu1 }
 0x5c0   : > { %3158 = vst [vmem:[%s417_s15] sm:$0xff] %v3154_v38  ;;  %v3156_v52 = vadd.f32 %v3152_v40, %v3137_v44  ;;  %v3139_v58 = vpop.f32.mrb[15].mxu1 }
 0x5c1   : > { %3159 = vst [vmem:[%s417_s15 + $0x8] sm:$0xff] %v3155_v43  ;;  %v3157_v46 = vadd.f32 %v3152_v40, %v3139_v58 }
 0x5c2   : > { %3160 = vst [vmem:[%s417_s15 + $0x10] sm:$0xff] %v3156_v52 }
 0x5c3   : > { %3161 = vst [vmem:[%s417_s15 + $0x18] sm:$0xff] %v3157_v46 }
 0x5c4   : > { %3694 = shalt.err (!%p3691_p11)
}
 0x5c5   : > { %s3695_s18 = scalar_lea.hbm %s4637_s30, 512  ;;  %s3699_s26 = scalar_lea.hbm %s4692_s10, 1024 }
 0x5c6   : > { %p3696_p3 = scmp.ne.s32.totalorder %s4637_s30, %s3695_s18  ;;  %p3700_p2 = scmp.lt.u32.totalorder %s4637_s30, %s4692_s10 }
 0x5c7   : > { %p3701_p4 = scmp.lt.u32.totalorder %s3699_s26, %s3695_s18  ;;  %p3703_p13 = scmp.lt.u32.totalorder %s3695_s18, %s4637_s30 }
 0x5c8   : > { %p3697_p8 = pnand %p3696_p3, %p4808_p1 }
 0x5c9   : > { %p3702_p6 = por %p3701_p4, %p3700_p2 }
 0x5ca   : > { %p3698_p0 = pneg %p3697_p8 }
 0x5cb   : > { %p3704_p12 = por %p3703_p13, %p3702_p6 }
 0x5cd   : > { %p3705_p10 = pnand %p3704_p12, %p3698_p0 }
 0x5cf   : > { %3708 = shalt.err (!%p3705_p10)
}
 0x5d0   : > { %s3776_s23 = smov 256  }
 0x5d1   : > { %3527 = dma.vmem_to_hbm [thread:$0]  (%p4808_p1), %s4632_s29, 512, %s4637_s30, %s3163_s17, %s3776_s23, %s3776_s23, %s3763_s19  }
 0x5d2 PF: > { %s4809_s24 = sld [smem:[#allocation15_spill]]  ;;  %s3191_s28 = sand.u32 1, %s3739_s13  }
 0x5d3   : > { %p4811_p7 = scmp.ge.s32.totalorder %s3751_s16, 2  ;;  %s3192_s21 = scalar_lea.sflag [#allocation5], %s3191_s28 }
 0x5d8   : > { %p4810_p5 = scmp.ne.s32.totalorder %s4809_s24, 0 }
 0x5da   : > { %p3537_p9 = pnand %p4811_p7, %p4810_p5 }
 0x5dc   : > { %3734 = dma.done.wait (!%p3537_p9), %s3192_s21, 512  }
 0x5dd   : > { %3736 = vsyncadd (!%p3537_p9), %s3192_s21, 4294966784  ;;  %s4812_s16 = sld [smem:[#allocation13_spill]]  ;;  %s4813_s25 = sld [smem:[#allocation12_spill]] }
 0x5de   : > { %s4814_s15 = sld [smem:[#allocation14_spill]]  ;;  %s4815_s13 = smov %s3743_s14 }
 0x5e3   : > { %p26_p11 = scmp.ge.s32.totalorder %s4812_s16, 4   ;;  %s4816_s14 = smov %s4813_s25 }
 0x5e5   :  { %28 = sbr.rel (!%p26_p11) target bundleno = 9 (0x9), region = 119 }
 0x5ec   :  { %3197 = vsyncpa [#allocation4], 1 }
 0x5ed   :  { %3199 = vsyncpa [#allocation4 + $0x1], 1 }
 0x5ee   :  { %3200 = vsyncpa [#allocation7], 1 }
 0x5ef   :  { %3202 = vsyncpa [#allocation7 + $0x1], 1 }
 0x5f0   :  { %3203 = vsyncpa [#allocation5], 1 }
 0x5f1   :  { %3205 = vsyncpa [#allocation5 + $0x1], 1 }

</bundles_post_ra>
